<compile_context>
chip_gen: v7x
topology: tpu7x:2x2x1
jax: 0.10.0
libtpu: 0.0.40
codegen_flags: <defaults>
</compile_context>

<pallas_src>
import jax
import jax.numpy as jnp
from jax.experimental import pallas as pl
from jax.experimental.pallas import tpu as pltpu

LANE = 128


def _round_up(x, m):
    return ((x + m - 1) // m) * m


# ----------------------------- Pallas kernel ---------------------------------

def _make_decoder_decode_kernel(n_layers):
    """Fused T-step decode kernel for a fixed number of LSTM layers."""

    def kernel(ids_ref, emb_ref, h_in_ref, c_in_ref, *args):
        # args = (wx_0, wh_0, b_0, ..., wx_{L-1}, wh_{L-1}, b_{L-1},
        #         fc_w, fc_b,                      # remaining inputs
        #         pred_out, h_out, c_out,          # outputs
        #         h_scr, c_scr)                    # scratch
        L = n_layers
        lstm_refs = args[:3 * L]
        fc_w_ref = args[3 * L]
        fc_b_ref = args[3 * L + 1]
        pred_ref = args[3 * L + 2]
        h_out_ref = args[3 * L + 3]
        c_out_ref = args[3 * L + 4]
        h_scr = args[3 * L + 5]
        c_scr = args[3 * L + 6]

        T, B, _ = ids_ref.shape
        V = emb_ref.shape[0]
        H = h_in_ref.shape[-1]
        Hp = h_scr.shape[-1]          # lane-padded hidden width (multiple of 128)
        G = 4 * Hp

        # ---- One-time init: lane-dense padded working state in VMEM scratch.
        # Pad lanes are zero and stay exactly zero across steps (weight/bias
        # pad columns are zero), so they never leak into the real lanes.
        h_scr[...] = jnp.zeros(h_scr.shape, jnp.float32)
        c_scr[...] = jnp.zeros(c_scr.shape, jnp.float32)
        for l in range(L):
            h_scr[l, :, 0:H] = h_in_ref[l]
            c_scr[l, :, 0:H] = c_in_ref[l]

        # ---- Hoisted loop invariants (JAX does not CSE broadcast_in_dim).
        vocab_iota = jax.lax.broadcasted_iota(jnp.int32, (B, V), 1)
        bias_b = [jnp.broadcast_to(lstm_refs[3 * l + 2][...], (B, G))
                  for l in range(L)]
        fc_b_b = jnp.broadcast_to(fc_b_ref[...], (B, fc_b_ref.shape[-1]))

        @pl.loop(0, T)
        def _step(t):
            # Embedding gather as a one-hot matmul (tiny vocab, MXU-friendly).
            ids_t = ids_ref[t]                                      # [B, 1] i32
            onehot = (vocab_iota == ids_t).astype(jnp.float32)      # [B, V]
            x = jnp.dot(onehot, emb_ref[...],
                        preferred_element_type=jnp.float32)         # [B, E]
            # Dropout on the embedded input: identity (eval mode).

            for l in range(L):                    # layer loop: Python unroll
                wx_ref = lstm_refs[3 * l]         # [in_pad, 4*Hp] f32
                wh_ref = lstm_refs[3 * l + 1]     # [Hp,     4*Hp] f32
                h = h_scr[l]                      # [B, Hp] f32 (lane-dense)
                c = c_scr[l]                      # [B, Hp] f32

                # Split matmuls (no lane concat): x@Wx + h@Wh + b.  Each gate
                # occupies its own 128-lane block of the 4*Hp gate axis.
                gates = (jnp.dot(x, wx_ref[...],
                                 preferred_element_type=jnp.float32)
                         + jnp.dot(h, wh_ref[...],
                                   preferred_element_type=jnp.float32)
                         + bias_b[l])                               # [B, 4*Hp]

                # PyTorch gate order: i, f, g, o.  Whole-vreg slices, f32 math.
                i = jax.nn.sigmoid(gates[:, 0 * Hp:1 * Hp])
                f = jax.nn.sigmoid(gates[:, 1 * Hp:2 * Hp])
                g = jnp.tanh(gates[:, 2 * Hp:3 * Hp])
                o = jax.nn.sigmoid(gates[:, 3 * Hp:4 * Hp])

                c_new = f * c + i * g
                h_new = o * jnp.tanh(c_new)

                h_scr[l] = h_new
                c_scr[l] = c_new
                # Inter-layer dropout: identity (eval mode).
                x = h_new                                           # [B, Hp]

            # fc_out on the top layer's hidden state -> lane-padded prediction.
            pred_ref[t] = (jnp.dot(x, fc_w_ref[...],
                                   preferred_element_type=jnp.float32)
                           + fc_b_b)                                # [B, Vp]

        # ---- Write the external [L, B, H] state layout exactly once.
        for l in range(L):
            h_out_ref[l] = h_scr[l, :, 0:H]
            c_out_ref[l] = c_scr[l, :, 0:H]

    return kernel


# ------------------------------ Wrapper ---------------------------------------

class DecoderPallas:
    """JAX/Pallas equivalent of the PyTorch Decoder module (eval mode).

    `decode(tokens, hidden, cell)` runs T teacher-forced steps in ONE fused
    pallas_call; `__call__(inp, hidden, cell)` matches the PyTorch forward
    (a single step, T == 1).
    """

    def __init__(self, out_dim, emb_dim, hid_dim, n_layers, dropout, key):
        self.out_dim = out_dim
        self.emb_dim = emb_dim
        self.hid_dim = hid_dim
        self.n_layers = n_layers
        self.dropout = dropout        # identity in eval mode

        H = hid_dim
        Hp = _round_up(H, LANE)       # lane-padded hidden width
        Vp = _round_up(out_dim, LANE)  # lane-padded prediction width
        self._Hp, self._Vp = Hp, Vp

        n_keys = 1 + 4 * n_layers + 2
        ks = list(jax.random.split(key, n_keys))

        def nrm(shape, scale=0.1):
            return (scale * jax.random.normal(ks.pop(0), shape)).astype(jnp.float32)

        # ---- raw (PyTorch-layout) parameters, kept for the pure-JAX reference.
        emb = nrm((out_dim, emb_dim))                    # Embedding weight
        layers = []
        for l in range(n_layers):
            in_dim = emb_dim if l == 0 else hid_dim
            w_ih = nrm((4 * H, in_dim))                  # weight_ih_l{k}
            w_hh = nrm((4 * H, H))                       # weight_hh_l{k}
            b_ih = nrm((4 * H,))
            b_hh = nrm((4 * H,))
            layers.append((w_ih, w_hh, b_ih, b_hh))
        fc_w = nrm((out_dim, H))                         # fc_out weight
        fc_b = nrm((out_dim,))                           # fc_out bias
        self.raw_params = dict(embedding=emb, layers=layers, fc_w=fc_w, fc_b=fc_b)

        # ---- kernel-layout parameters: each gate placed in its own 128-lane
        # block; pad rows/columns are zero so pad lanes of h/c never leak.
        packed = [emb]
        for l, (w_ih, w_hh, b_ih, b_hh) in enumerate(layers):
            in_dim = emb_dim if l == 0 else hid_dim
            in_pad = in_dim if l == 0 else Hp            # layer>0 input is padded h
            wx = jnp.zeros((in_pad, 4 * Hp), jnp.float32)
            wh = jnp.zeros((Hp, 4 * Hp), jnp.float32)
            b = jnp.zeros((1, 4 * Hp), jnp.float32)
            bsum = b_ih + b_hh
            for k in range(4):                           # gate order: i, f, g, o
                wx = wx.at[:in_dim, k * Hp:k * Hp + H].set(
                    w_ih[k * H:(k + 1) * H, :].T)
                wh = wh.at[:H, k * Hp:k * Hp + H].set(
                    w_hh[k * H:(k + 1) * H, :].T)
                b = b.at[0, k * Hp:k * Hp + H].set(bsum[k * H:(k + 1) * H])
            packed += [wx, wh, b]
        fc_w_pad = jnp.zeros((Hp, Vp), jnp.float32).at[:H, :out_dim].set(fc_w.T)
        fc_b_pad = jnp.zeros((1, Vp), jnp.float32).at[0, :out_dim].set(fc_b)
        packed += [fc_w_pad, fc_b_pad]
        self.params = tuple(packed)

        self._kernel = _make_decoder_decode_kernel(n_layers)
        # Donate hidden/cell so input_output_aliases updates state in place.
        self._decode_jit = jax.jit(self._decode_impl, donate_argnums=(1, 2))

    # ---- jitted implementation -------------------------------------------------
    def _decode_impl(self, ids, hidden, cell, params):
        T, B, _ = ids.shape
        L, _, H = hidden.shape
        Hp, Vp = self._Hp, self._Vp

        inputs = (ids, params[0], hidden, cell) + params[1:]
        full = lambda a: pl.BlockSpec(a.shape, lambda: (0,) * a.ndim)

        out_shape = (
            jax.ShapeDtypeStruct((T, B, Vp), jnp.float32),   # padded predictions
            jax.ShapeDtypeStruct((L, B, H), jnp.float32),    # hidden
            jax.ShapeDtypeStruct((L, B, H), jnp.float32),    # cell
        )
        out_specs = (
            pl.BlockSpec((T, B, Vp), lambda: (0, 0, 0)),
            pl.BlockSpec((L, B, H), lambda: (0, 0, 0)),
            pl.BlockSpec((L, B, H), lambda: (0, 0, 0)),
        )
        scratch = [pltpu.VMEM((L, B, Hp), jnp.float32),      # h working state
                   pltpu.VMEM((L, B, Hp), jnp.float32)]      # c working state

        preds_pad, h_out, c_out = pl.pallas_call(
            self._kernel,
            out_shape=out_shape,
            in_specs=[full(a) for a in inputs],
            out_specs=out_specs,
            scratch_shapes=scratch,
            # hidden (input 2) -> h_out (output 1); cell (input 3) -> c_out
            # (output 2): in-place state update (caller donates via jit).
            input_output_aliases={2: 1, 3: 2},
        )(*inputs)
        return preds_pad[:, :, :self.out_dim], h_out, c_out

    # ---- public API --------------------------------------------------------------
    def decode(self, tokens, hidden, cell):
        """Run T teacher-forced decode steps in one fused pallas_call.

        tokens: [T, B] int ids; hidden, cell: [n_layers, B, H] f32 (donated).
        Returns (predictions [T, B, out_dim], hidden, cell).
        """
        ids = tokens.astype(jnp.int32)[:, :, None]           # [T, B, 1]
        return self._decode_jit(ids, hidden, cell, self.params)

    def __call__(self, inp, hidden, cell):
        """Single decode step; matches the PyTorch Decoder.forward signature."""
        preds, h, c = self.decode(inp[None, :], hidden, cell)
        return preds[0], h, c


# ---------------------------- pure-JAX reference --------------------------------

def _reference_decode(raw, tokens, hidden, cell):
    emb = raw["embedding"]
    fc_w, fc_b = raw["fc_w"], raw["fc_b"]
    H = hidden.shape[-1]
    h = [hidden[l] for l in range(hidden.shape[0])]
    c = [cell[l] for l in range(cell.shape[0])]
    preds = []
    for t in range(tokens.shape[0]):
        x = emb[tokens[t]]
        for l, (w_ih, w_hh, b_ih, b_hh) in enumerate(raw["layers"]):
            gates = x @ w_ih.T + b_ih + h[l] @ w_hh.T + b_hh
            i = jax.nn.sigmoid(gates[:, 0 * H:1 * H])
            f = jax.nn.sigmoid(gates[:, 1 * H:2 * H])
            g = jnp.tanh(gates[:, 2 * H:3 * H])
            o = jax.nn.sigmoid(gates[:, 3 * H:4 * H])
            c[l] = f * c[l] + i * g
            h[l] = o * jnp.tanh(c[l])
            x = h[l]
        preds.append(x @ fc_w.T + fc_b)
    return jnp.stack(preds), jnp.stack(h), jnp.stack(c)


# ------------------------------- main --------------------------------------------

if __name__ == "__main__":
    out_dim, emb_dim, hid_dim, n_layers = 32, 32, 32, 2
    batch, steps = 8, 8

    key = jax.random.PRNGKey(0)
    k_params, k_tok, k_h, k_c = jax.random.split(key, 4)

    decoder = DecoderPallas(out_dim, emb_dim, hid_dim, n_layers,
                            dropout=0.5, key=k_params)

    tokens = jax.random.randint(k_tok, (steps, batch), 0, out_dim, dtype=jnp.int32)
    hidden = (0.1 * jax.random.normal(k_h, (n_layers, batch, hid_dim))
              ).astype(jnp.float32)
    cell = (0.1 * jax.random.normal(k_c, (n_layers, batch, hid_dim))
            ).astype(jnp.float32)

    # Pure-JAX reference computed BEFORE the kernel call (hidden/cell donated).
    ref_preds, ref_h, ref_c = _reference_decode(decoder.raw_params, tokens,
                                                hidden, cell)

    # Fused multi-step decode: one pallas_call for all `steps` tokens.
    preds, hidden_out, cell_out = decoder.decode(tokens, hidden, cell)
    jax.block_until_ready((preds, hidden_out, cell_out))

    assert preds.shape == (steps, batch, out_dim)
    assert hidden_out.shape == (n_layers, batch, hid_dim)
    assert cell_out.shape == (n_layers, batch, hid_dim)
    assert bool(jnp.all(jnp.isfinite(preds)))
    assert float(jnp.max(jnp.abs(preds - ref_preds))) < 5e-2
    assert float(jnp.max(jnp.abs(hidden_out - ref_h))) < 5e-2
    assert float(jnp.max(jnp.abs(cell_out - ref_c))) < 5e-2

    # Single-step path (PyTorch forward signature); donates hidden_out/cell_out.
    pred1, h1, c1 = decoder(tokens[-1], hidden_out, cell_out)
    jax.block_until_ready((pred1, h1, c1))
    assert pred1.shape == (batch, out_dim)
    assert h1.shape == (n_layers, batch, hid_dim)

    print("KERNEL_OK")
</pallas_src>

<mosaic_0001>
module attributes {stable_mosaic.version = 11 : i64} {
  func.func @kernel(%arg0: memref<8x8x1xi32, #tpu.memory_space<vmem>>, %arg1: memref<32x32xf32, #tpu.memory_space<vmem>>, %arg2: memref<2x8x32xf32, #tpu.memory_space<vmem>>, %arg3: memref<2x8x32xf32, #tpu.memory_space<vmem>>, %arg4: memref<32x512xf32, #tpu.memory_space<vmem>>, %arg5: memref<128x512xf32, #tpu.memory_space<vmem>>, %arg6: memref<1x512xf32, #tpu.memory_space<vmem>>, %arg7: memref<128x512xf32, #tpu.memory_space<vmem>>, %arg8: memref<128x512xf32, #tpu.memory_space<vmem>>, %arg9: memref<1x512xf32, #tpu.memory_space<vmem>>, %arg10: memref<128x128xf32, #tpu.memory_space<vmem>>, %arg11: memref<1x128xf32, #tpu.memory_space<vmem>>, %arg12: memref<8x8x128xf32, #tpu.memory_space<vmem>>, %arg13: memref<2x8x32xf32, #tpu.memory_space<vmem>>, %arg14: memref<2x8x32xf32, #tpu.memory_space<vmem>>, %arg15: memref<2x8x128xf32, #tpu.memory_space<vmem>>, %arg16: memref<2x8x128xf32, #tpu.memory_space<vmem>>) attributes {dimension_semantics = [], scalar_prefetch = 0 : i64, scratch_operands = 2 : i64, tpu.core_type = #tpu.core_type<tc>} {
    %cst = arith.constant 0.000000e+00 : f32
    %0 = vector.broadcast %cst : f32 to vector<2x8x128xf32>
    %c0 = arith.constant 0 : index
    %c0_0 = arith.constant 0 : index
    %c0_1 = arith.constant 0 : index
    %1 = vector.load %arg15[%c0, %c0_0, %c0_1] : memref<2x8x128xf32, #tpu.memory_space<vmem>>, vector<2x8x128xf32>
    tpu.vector_store %arg15[%c0, %c0_0, %c0_1], %0 {strides = array<i32>} : memref<2x8x128xf32, #tpu.memory_space<vmem>>, vector<2x8x128xf32>,
    %cst_2 = arith.constant 0.000000e+00 : f32
    %2 = vector.broadcast %cst_2 : f32 to vector<2x8x128xf32>
    %c0_3 = arith.constant 0 : index
    %c0_4 = arith.constant 0 : index
    %c0_5 = arith.constant 0 : index
    %3 = vector.load %arg16[%c0_3, %c0_4, %c0_5] : memref<2x8x128xf32, #tpu.memory_space<vmem>>, vector<2x8x128xf32>
    tpu.vector_store %arg16[%c0_3, %c0_4, %c0_5], %2 {strides = array<i32>} : memref<2x8x128xf32, #tpu.memory_space<vmem>>, vector<2x8x128xf32>,
    %c0_6 = arith.constant 0 : index
    %c0_7 = arith.constant 0 : index
    %c0_8 = arith.constant 0 : index
    %4 = vector.load %arg2[%c0_6, %c0_7, %c0_8] : memref<2x8x32xf32, #tpu.memory_space<vmem>>, vector<1x8x32xf32>
    %5 = vector.shape_cast %4 : vector<1x8x32xf32> to vector<8x32xf32>
    %c0_9 = arith.constant 0 : index
    %c0_10 = arith.constant 0 : index
    %c0_11 = arith.constant 0 : index
    %6 = vector.load %arg15[%c0_9, %c0_10, %c0_11] : memref<2x8x128xf32, #tpu.memory_space<vmem>>, vector<1x8x32xf32>
    %7 = vector.shape_cast %6 : vector<1x8x32xf32> to vector<8x32xf32>
    %8 = vector.shape_cast %5 : vector<8x32xf32> to vector<1x8x32xf32>
    tpu.vector_store %arg15[%c0_9, %c0_10, %c0_11], %8 {strides = array<i32>} : memref<2x8x128xf32, #tpu.memory_space<vmem>>, vector<1x8x32xf32>,
    %c0_12 = arith.constant 0 : index
    %c0_13 = arith.constant 0 : index
    %c0_14 = arith.constant 0 : index
    %9 = vector.load %arg3[%c0_12, %c0_13, %c0_14] : memref<2x8x32xf32, #tpu.memory_space<vmem>>, vector<1x8x32xf32>
    %10 = vector.shape_cast %9 : vector<1x8x32xf32> to vector<8x32xf32>
    %c0_15 = arith.constant 0 : index
    %c0_16 = arith.constant 0 : index
    %c0_17 = arith.constant 0 : index
    %11 = vector.load %arg16[%c0_15, %c0_16, %c0_17] : memref<2x8x128xf32, #tpu.memory_space<vmem>>, vector<1x8x32xf32>
    %12 = vector.shape_cast %11 : vector<1x8x32xf32> to vector<8x32xf32>
    %13 = vector.shape_cast %10 : vector<8x32xf32> to vector<1x8x32xf32>
    tpu.vector_store %arg16[%c0_15, %c0_16, %c0_17], %13 {strides = array<i32>} : memref<2x8x128xf32, #tpu.memory_space<vmem>>, vector<1x8x32xf32>,
    %c1 = arith.constant 1 : index
    %c0_18 = arith.constant 0 : index
    %c0_19 = arith.constant 0 : index
    %14 = vector.load %arg2[%c1, %c0_18, %c0_19] : memref<2x8x32xf32, #tpu.memory_space<vmem>>, vector<1x8x32xf32>
    %15 = vector.shape_cast %14 : vector<1x8x32xf32> to vector<8x32xf32>
    %c1_20 = arith.constant 1 : index
    %c0_21 = arith.constant 0 : index
    %c0_22 = arith.constant 0 : index
    %16 = vector.load %arg15[%c1_20, %c0_21, %c0_22] : memref<2x8x128xf32, #tpu.memory_space<vmem>>, vector<1x8x32xf32>
    %17 = vector.shape_cast %16 : vector<1x8x32xf32> to vector<8x32xf32>
    %18 = vector.shape_cast %15 : vector<8x32xf32> to vector<1x8x32xf32>
    tpu.vector_store %arg15[%c1_20, %c0_21, %c0_22], %18 {strides = array<i32>} : memref<2x8x128xf32, #tpu.memory_space<vmem>>, vector<1x8x32xf32>,
    %c1_23 = arith.constant 1 : index
    %c0_24 = arith.constant 0 : index
    %c0_25 = arith.constant 0 : index
    %19 = vector.load %arg3[%c1_23, %c0_24, %c0_25] : memref<2x8x32xf32, #tpu.memory_space<vmem>>, vector<1x8x32xf32>
    %20 = vector.shape_cast %19 : vector<1x8x32xf32> to vector<8x32xf32>
    %c1_26 = arith.constant 1 : index
    %c0_27 = arith.constant 0 : index
    %c0_28 = arith.constant 0 : index
    %21 = vector.load %arg16[%c1_26, %c0_27, %c0_28] : memref<2x8x128xf32, #tpu.memory_space<vmem>>, vector<1x8x32xf32>
    %22 = vector.shape_cast %21 : vector<1x8x32xf32> to vector<8x32xf32>
    %23 = vector.shape_cast %20 : vector<8x32xf32> to vector<1x8x32xf32>
    tpu.vector_store %arg16[%c1_26, %c0_27, %c0_28], %23 {strides = array<i32>} : memref<2x8x128xf32, #tpu.memory_space<vmem>>, vector<1x8x32xf32>,
    %24 = tpu.iota {dimensions = array<i32: 1>} : vector<8x32xi32>
    %c0_29 = arith.constant 0 : index
    %c0_30 = arith.constant 0 : index
    %25 = vector.load %arg6[%c0_29, %c0_30] : memref<1x512xf32, #tpu.memory_space<vmem>>, vector<1x512xf32>
    %26 = vector.shape_cast %25 : vector<1x512xf32> to vector<1x512xf32>
    %27 = vector.broadcast %26 : vector<1x512xf32> to vector<8x512xf32>
    %c0_31 = arith.constant 0 : index
    %c0_32 = arith.constant 0 : index
    %28 = vector.load %arg9[%c0_31, %c0_32] : memref<1x512xf32, #tpu.memory_space<vmem>>, vector<1x512xf32>
    %29 = vector.shape_cast %28 : vector<1x512xf32> to vector<1x512xf32>
    %30 = vector.broadcast %29 : vector<1x512xf32> to vector<8x512xf32>
    %c0_33 = arith.constant 0 : index
    %c0_34 = arith.constant 0 : index
    %31 = vector.load %arg11[%c0_33, %c0_34] : memref<1x128xf32, #tpu.memory_space<vmem>>, vector<1x128xf32>
    %32 = vector.shape_cast %31 : vector<1x128xf32> to vector<1x128xf32>
    %33 = vector.broadcast %32 : vector<1x128xf32> to vector<8x128xf32>
    %c0_i32 = arith.constant 0 : i32
    %c8_i32 = arith.constant 8 : i32
    %34 = arith.addi %c0_i32, %c8_i32 : i32
    %c1_i32 = arith.constant 1 : i32
    scf.for %arg17 = %c0_i32 to %34 step %c1_i32  : i32 {
      %c1_i32_60 = arith.constant 1 : i32
      %55 = arith.muli %arg17, %c1_i32_60 : i32
      %c0_i32_61 = arith.constant 0 : i32
      %56 = arith.addi %c0_i32_61, %55 : i32
      %57 = arith.index_cast %56 : i32 to index
      %c0_62 = arith.constant 0 : index
      %c0_63 = arith.constant 0 : index
      %58 = vector.load %arg0[%57, %c0_62, %c0_63] : memref<8x8x1xi32, #tpu.memory_space<vmem>>, vector<1x8x1xi32>
      %59 = vector.shape_cast %58 : vector<1x8x1xi32> to vector<8x1xi32>
      %60 = vector.broadcast %59 : vector<8x1xi32> to vector<8x32xi32>
      %61 = arith.cmpi eq, %24, %60 : vector<8x32xi32>
      %62 = arith.extui %61 : vector<8x32xi1> to vector<8x32xi32>
      %63 = arith.sitofp %62 : vector<8x32xi32> to vector<8x32xf32>
      %c0_64 = arith.constant 0 : index
      %c0_65 = arith.constant 0 : index
      %64 = vector.load %arg1[%c0_64, %c0_65] : memref<32x32xf32, #tpu.memory_space<vmem>>, vector<32x32xf32>
      %cst_66 = arith.constant dense<0.000000e+00> : vector<8x32xf32>
      %65 = tpu.matmul %63, %64, %cst_66 {dimension_numbers = #tpu.dot_dimension_numbers<[1], [0], [0], [1], [0, 0, 1, 1], [], []>} : vector<8x32xf32>, vector<32x32xf32>, vector<8x32xf32> -> vector<8x32xf32>
      %c0_67 = arith.constant 0 : index
      %c0_68 = arith.constant 0 : index
      %c0_69 = arith.constant 0 : index
      %66 = vector.load %arg15[%c0_67, %c0_68, %c0_69] : memref<2x8x128xf32, #tpu.memory_space<vmem>>, vector<1x8x128xf32>
      %67 = vector.shape_cast %66 : vector<1x8x128xf32> to vector<8x128xf32>
      %c0_70 = arith.constant 0 : index
      %c0_71 = arith.constant 0 : index
      %c0_72 = arith.constant 0 : index
      %68 = vector.load %arg16[%c0_70, %c0_71, %c0_72] : memref<2x8x128xf32, #tpu.memory_space<vmem>>, vector<1x8x128xf32>
      %69 = vector.shape_cast %68 : vector<1x8x128xf32> to vector<8x128xf32>
      %c0_73 = arith.constant 0 : index
      %c0_74 = arith.constant 0 : index
      %70 = vector.load %arg4[%c0_73, %c0_74] : memref<32x512xf32, #tpu.memory_space<vmem>>, vector<32x512xf32>
      %cst_75 = arith.constant dense<0.000000e+00> : vector<8x512xf32>
      %71 = tpu.matmul %65, %70, %cst_75 {dimension_numbers = #tpu.dot_dimension_numbers<[1], [0], [0], [1], [0, 0, 1, 1], [], []>} : vector<8x32xf32>, vector<32x512xf32>, vector<8x512xf32> -> vector<8x512xf32>
      %c0_76 = arith.constant 0 : index
      %c0_77 = arith.constant 0 : index
      %72 = vector.load %arg5[%c0_76, %c0_77] : memref<128x512xf32, #tpu.memory_space<vmem>>, vector<128x512xf32>
      %cst_78 = arith.constant dense<0.000000e+00> : vector<8x512xf32>
      %73 = tpu.matmul %67, %72, %cst_78 {dimension_numbers = #tpu.dot_dimension_numbers<[1], [0], [0], [1], [0, 0, 1, 1], [], []>} : vector<8x128xf32>, vector<128x512xf32>, vector<8x512xf32> -> vector<8x512xf32>
      %74 = arith.addf %71, %73 : vector<8x512xf32>
      %75 = arith.addf %74, %27 : vector<8x512xf32>
      %76 = vector.extract_strided_slice %75 {offsets = [0, 0], sizes = [8, 128], strides = [1, 1]} : vector<8x512xf32> to vector<8x128xf32>
      %77 = arith.negf %76 : vector<8x128xf32>
      %78 = math.exp %77 : vector<8x128xf32>
      %cst_79 = arith.constant 1.000000e+00 : f32
      %79 = vector.broadcast %cst_79 : f32 to vector<8x128xf32>
      %80 = arith.addf %79, %78 : vector<8x128xf32>
      %81 = arith.divf %79, %80 : vector<8x128xf32>
      %82 = vector.extract_strided_slice %75 {offsets = [0, 128], sizes = [8, 128], strides = [1, 1]} : vector<8x512xf32> to vector<8x128xf32>
      %83 = arith.negf %82 : vector<8x128xf32>
      %84 = math.exp %83 : vector<8x128xf32>
      %cst_80 = arith.constant 1.000000e+00 : f32
      %85 = vector.broadcast %cst_80 : f32 to vector<8x128xf32>
      %86 = arith.addf %85, %84 : vector<8x128xf32>
      %87 = arith.divf %85, %86 : vector<8x128xf32>
      %88 = vector.extract_strided_slice %75 {offsets = [0, 256], sizes = [8, 128], strides = [1, 1]} : vector<8x512xf32> to vector<8x128xf32>
      %89 = math.tanh %88 : vector<8x128xf32>
      %90 = vector.extract_strided_slice %75 {offsets = [0, 384], sizes = [8, 128], strides = [1, 1]} : vector<8x512xf32> to vector<8x128xf32>
      %91 = arith.negf %90 : vector<8x128xf32>
      %92 = math.exp %91 : vector<8x128xf32>
      %cst_81 = arith.constant 1.000000e+00 : f32
      %93 = vector.broadcast %cst_81 : f32 to vector<8x128xf32>
      %94 = arith.addf %93, %92 : vector<8x128xf32>
      %95 = arith.divf %93, %94 : vector<8x128xf32>
      %96 = arith.mulf %87, %69 : vector<8x128xf32>
      %97 = arith.mulf %81, %89 : vector<8x128xf32>
      %98 = arith.addf %96, %97 : vector<8x128xf32>
      %99 = math.tanh %98 : vector<8x128xf32>
      %100 = arith.mulf %95, %99 : vector<8x128xf32>
      %c0_82 = arith.constant 0 : index
      %c0_83 = arith.constant 0 : index
      %c0_84 = arith.constant 0 : index
      %101 = vector.load %arg15[%c0_82, %c0_83, %c0_84] : memref<2x8x128xf32, #tpu.memory_space<vmem>>, vector<1x8x128xf32>
      %102 = vector.shape_cast %101 : vector<1x8x128xf32> to vector<8x128xf32>
      %103 = vector.shape_cast %100 : vector<8x128xf32> to vector<1x8x128xf32>
      tpu.vector_store %arg15[%c0_82, %c0_83, %c0_84], %103 {strides = array<i32>} : memref<2x8x128xf32, #tpu.memory_space<vmem>>, vector<1x8x128xf32>,
      %c0_85 = arith.constant 0 : index
      %c0_86 = arith.constant 0 : index
      %c0_87 = arith.constant 0 : index
      %104 = vector.load %arg16[%c0_85, %c0_86, %c0_87] : memref<2x8x128xf32, #tpu.memory_space<vmem>>, vector<1x8x128xf32>
      %105 = vector.shape_cast %104 : vector<1x8x128xf32> to vector<8x128xf32>
      %106 = vector.shape_cast %98 : vector<8x128xf32> to vector<1x8x128xf32>
      tpu.vector_store %arg16[%c0_85, %c0_86, %c0_87], %106 {strides = array<i32>} : memref<2x8x128xf32, #tpu.memory_space<vmem>>, vector<1x8x128xf32>,
      %c1_88 = arith.constant 1 : index
      %c0_89 = arith.constant 0 : index
      %c0_90 = arith.constant 0 : index
      %107 = vector.load %arg15[%c1_88, %c0_89, %c0_90] : memref<2x8x128xf32, #tpu.memory_space<vmem>>, vector<1x8x128xf32>
      %108 = vector.shape_cast %107 : vector<1x8x128xf32> to vector<8x128xf32>
      %c1_91 = arith.constant 1 : index
      %c0_92 = arith.constant 0 : index
      %c0_93 = arith.constant 0 : index
      %109 = vector.load %arg16[%c1_91, %c0_92, %c0_93] : memref<2x8x128xf32, #tpu.memory_space<vmem>>, vector<1x8x128xf32>
      %110 = vector.shape_cast %109 : vector<1x8x128xf32> to vector<8x128xf32>
      %c0_94 = arith.constant 0 : index
      %c0_95 = arith.constant 0 : index
      %111 = vector.load %arg7[%c0_94, %c0_95] : memref<128x512xf32, #tpu.memory_space<vmem>>, vector<128x512xf32>
      %cst_96 = arith.constant dense<0.000000e+00> : vector<8x512xf32>
      %112 = tpu.matmul %100, %111, %cst_96 {dimension_numbers = #tpu.dot_dimension_numbers<[1], [0], [0], [1], [0, 0, 1, 1], [], []>} : vector<8x128xf32>, vector<128x512xf32>, vector<8x512xf32> -> vector<8x512xf32>
      %c0_97 = arith.constant 0 : index
      %c0_98 = arith.constant 0 : index
      %113 = vector.load %arg8[%c0_97, %c0_98] : memref<128x512xf32, #tpu.memory_space<vmem>>, vector<128x512xf32>
      %cst_99 = arith.constant dense<0.000000e+00> : vector<8x512xf32>
      %114 = tpu.matmul %108, %113, %cst_99 {dimension_numbers = #tpu.dot_dimension_numbers<[1], [0], [0], [1], [0, 0, 1, 1], [], []>} : vector<8x128xf32>, vector<128x512xf32>, vector<8x512xf32> -> vector<8x512xf32>
      %115 = arith.addf %112, %114 : vector<8x512xf32>
      %116 = arith.addf %115, %30 : vector<8x512xf32>
      %117 = vector.extract_strided_slice %116 {offsets = [0, 0], sizes = [8, 128], strides = [1, 1]} : vector<8x512xf32> to vector<8x128xf32>
      %118 = arith.negf %117 : vector<8x128xf32>
      %119 = math.exp %118 : vector<8x128xf32>
      %cst_100 = arith.constant 1.000000e+00 : f32
      %120 = vector.broadcast %cst_100 : f32 to vector<8x128xf32>
      %121 = arith.addf %120, %119 : vector<8x128xf32>
      %122 = arith.divf %120, %121 : vector<8x128xf32>
      %123 = vector.extract_strided_slice %116 {offsets = [0, 128], sizes = [8, 128], strides = [1, 1]} : vector<8x512xf32> to vector<8x128xf32>
      %124 = arith.negf %123 : vector<8x128xf32>
      %125 = math.exp %124 : vector<8x128xf32>
      %cst_101 = arith.constant 1.000000e+00 : f32
      %126 = vector.broadcast %cst_101 : f32 to vector<8x128xf32>
      %127 = arith.addf %126, %125 : vector<8x128xf32>
      %128 = arith.divf %126, %127 : vector<8x128xf32>
      %129 = vector.extract_strided_slice %116 {offsets = [0, 256], sizes = [8, 128], strides = [1, 1]} : vector<8x512xf32> to vector<8x128xf32>
      %130 = math.tanh %129 : vector<8x128xf32>
      %131 = vector.extract_strided_slice %116 {offsets = [0, 384], sizes = [8, 128], strides = [1, 1]} : vector<8x512xf32> to vector<8x128xf32>
      %132 = arith.negf %131 : vector<8x128xf32>
      %133 = math.exp %132 : vector<8x128xf32>
      %cst_102 = arith.constant 1.000000e+00 : f32
      %134 = vector.broadcast %cst_102 : f32 to vector<8x128xf32>
      %135 = arith.addf %134, %133 : vector<8x128xf32>
      %136 = arith.divf %134, %135 : vector<8x128xf32>
      %137 = arith.mulf %128, %110 : vector<8x128xf32>
      %138 = arith.mulf %122, %130 : vector<8x128xf32>
      %139 = arith.addf %137, %138 : vector<8x128xf32>
      %140 = math.tanh %139 : vector<8x128xf32>
      %141 = arith.mulf %136, %140 : vector<8x128xf32>
      %c1_103 = arith.constant 1 : index
      %c0_104 = arith.constant 0 : index
      %c0_105 = arith.constant 0 : index
      %142 = vector.load %arg15[%c1_103, %c0_104, %c0_105] : memref<2x8x128xf32, #tpu.memory_space<vmem>>, vector<1x8x128xf32>
      %143 = vector.shape_cast %142 : vector<1x8x128xf32> to vector<8x128xf32>
      %144 = vector.shape_cast %141 : vector<8x128xf32> to vector<1x8x128xf32>
      tpu.vector_store %arg15[%c1_103, %c0_104, %c0_105], %144 {strides = array<i32>} : memref<2x8x128xf32, #tpu.memory_space<vmem>>, vector<1x8x128xf32>,
      %c1_106 = arith.constant 1 : index
      %c0_107 = arith.constant 0 : index
      %c0_108 = arith.constant 0 : index
      %145 = vector.load %arg16[%c1_106, %c0_107, %c0_108] : memref<2x8x128xf32, #tpu.memory_space<vmem>>, vector<1x8x128xf32>
      %146 = vector.shape_cast %145 : vector<1x8x128xf32> to vector<8x128xf32>
      %147 = vector.shape_cast %139 : vector<8x128xf32> to vector<1x8x128xf32>
      tpu.vector_store %arg16[%c1_106, %c0_107, %c0_108], %147 {strides = array<i32>} : memref<2x8x128xf32, #tpu.memory_space<vmem>>, vector<1x8x128xf32>,
      %c0_109 = arith.constant 0 : index
      %c0_110 = arith.constant 0 : index
      %148 = vector.load %arg10[%c0_109, %c0_110] : memref<128x128xf32, #tpu.memory_space<vmem>>, vector<128x128xf32>
      %cst_111 = arith.constant dense<0.000000e+00> : vector<8x128xf32>
      %149 = tpu.matmul %141, %148, %cst_111 {dimension_numbers = #tpu.dot_dimension_numbers<[1], [0], [0], [1], [0, 0, 1, 1], [], []>} : vector<8x128xf32>, vector<128x128xf32>, vector<8x128xf32> -> vector<8x128xf32>
      %150 = arith.addf %149, %33 : vector<8x128xf32>
      %151 = arith.index_cast %56 : i32 to index
      %c0_112 = arith.constant 0 : index
      %c0_113 = arith.constant 0 : index
      %152 = vector.load %arg12[%151, %c0_112, %c0_113] : memref<8x8x128xf32, #tpu.memory_space<vmem>>, vector<1x8x128xf32>
      %153 = vector.shape_cast %152 : vector<1x8x128xf32> to vector<8x128xf32>
      %154 = vector.shape_cast %150 : vector<8x128xf32> to vector<1x8x128xf32>
      tpu.vector_store %arg12[%151, %c0_112, %c0_113], %154 {strides = array<i32>} : memref<8x8x128xf32, #tpu.memory_space<vmem>>, vector<1x8x128xf32>,
    }
    %c8_i32_35 = arith.constant 8 : i32
    %c0_36 = arith.constant 0 : index
    %c0_37 = arith.constant 0 : index
    %c0_38 = arith.constant 0 : index
    %35 = vector.load %arg15[%c0_36, %c0_37, %c0_38] : memref<2x8x128xf32, #tpu.memory_space<vmem>>, vector<1x8x32xf32>
    %36 = vector.shape_cast %35 : vector<1x8x32xf32> to vector<8x32xf32>
    %c0_39 = arith.constant 0 : index
    %c0_40 = arith.constant 0 : index
    %c0_41 = arith.constant 0 : index
    %37 = vector.load %arg13[%c0_39, %c0_40, %c0_41] : memref<2x8x32xf32, #tpu.memory_space<vmem>>, vector<1x8x32xf32>
    %38 = vector.shape_cast %37 : vector<1x8x32xf32> to vector<8x32xf32>
    %39 = vector.shape_cast %36 : vector<8x32xf32> to vector<1x8x32xf32>
    tpu.vector_store %arg13[%c0_39, %c0_40, %c0_41], %39 {strides = array<i32>} : memref<2x8x32xf32, #tpu.memory_space<vmem>>, vector<1x8x32xf32>,
    %c0_42 = arith.constant 0 : index
    %c0_43 = arith.constant 0 : index
    %c0_44 = arith.constant 0 : index
    %40 = vector.load %arg16[%c0_42, %c0_43, %c0_44] : memref<2x8x128xf32, #tpu.memory_space<vmem>>, vector<1x8x32xf32>
    %41 = vector.shape_cast %40 : vector<1x8x32xf32> to vector<8x32xf32>
    %c0_45 = arith.constant 0 : index
    %c0_46 = arith.constant 0 : index
    %c0_47 = arith.constant 0 : index
    %42 = vector.load %arg14[%c0_45, %c0_46, %c0_47] : memref<2x8x32xf32, #tpu.memory_space<vmem>>, vector<1x8x32xf32>
    %43 = vector.shape_cast %42 : vector<1x8x32xf32> to vector<8x32xf32>
    %44 = vector.shape_cast %41 : vector<8x32xf32> to vector<1x8x32xf32>
    tpu.vector_store %arg14[%c0_45, %c0_46, %c0_47], %44 {strides = array<i32>} : memref<2x8x32xf32, #tpu.memory_space<vmem>>, vector<1x8x32xf32>,
    %c1_48 = arith.constant 1 : index
    %c0_49 = arith.constant 0 : index
    %c0_50 = arith.constant 0 : index
    %45 = vector.load %arg15[%c1_48, %c0_49, %c0_50] : memref<2x8x128xf32, #tpu.memory_space<vmem>>, vector<1x8x32xf32>
    %46 = vector.shape_cast %45 : vector<1x8x32xf32> to vector<8x32xf32>
    %c1_51 = arith.constant 1 : index
    %c0_52 = arith.constant 0 : index
    %c0_53 = arith.constant 0 : index
    %47 = vector.load %arg13[%c1_51, %c0_52, %c0_53] : memref<2x8x32xf32, #tpu.memory_space<vmem>>, vector<1x8x32xf32>
    %48 = vector.shape_cast %47 : vector<1x8x32xf32> to vector<8x32xf32>
    %49 = vector.shape_cast %46 : vector<8x32xf32> to vector<1x8x32xf32>
    tpu.vector_store %arg13[%c1_51, %c0_52, %c0_53], %49 {strides = array<i32>} : memref<2x8x32xf32, #tpu.memory_space<vmem>>, vector<1x8x32xf32>,
    %c1_54 = arith.constant 1 : index
    %c0_55 = arith.constant 0 : index
    %c0_56 = arith.constant 0 : index
    %50 = vector.load %arg16[%c1_54, %c0_55, %c0_56] : memref<2x8x128xf32, #tpu.memory_space<vmem>>, vector<1x8x32xf32>
    %51 = vector.shape_cast %50 : vector<1x8x32xf32> to vector<8x32xf32>
    %c1_57 = arith.constant 1 : index
    %c0_58 = arith.constant 0 : index
    %c0_59 = arith.constant 0 : index
    %52 = vector.load %arg14[%c1_57, %c0_58, %c0_59] : memref<2x8x32xf32, #tpu.memory_space<vmem>>, vector<1x8x32xf32>
    %53 = vector.shape_cast %52 : vector<1x8x32xf32> to vector<8x32xf32>
    %54 = vector.shape_cast %51 : vector<8x32xf32> to vector<1x8x32xf32>
    tpu.vector_store %arg14[%c1_57, %c0_58, %c0_59], %54 {strides = array<i32>} : memref<2x8x32xf32, #tpu.memory_space<vmem>>, vector<1x8x32xf32>,
    return
  }
}

</mosaic_0001>

<bundles_post_ra>
// kernel: _decode_impl.1
= control target key start
LH: loop header
LB: loop body
LE: loop exit
PB: predicated region body
PF: predicated region fallthrough
CT: control target
= control target key end

     0   :  { %20 = vsyncpa [#allocation5], 0  ;;  %s2115_s0 = inlined_call_operand.vmem [shape: s32[8,8,1], index: 0, kind: input, shape index: {}]   ;;  %s2116_s1 = inlined_call_operand.vmem [shape: f32[32,32], index: 1, kind: input, shape index: {}]   ;;  %s2117_s2 = inlined_call_operand.vmem [shape: f32[2,8,32], index: 2, kind: input, shape index: {}, may-alias: {2,13}]   ;;  %s2118_s3 = inlined_call_operand.vmem [shape: f32[2,8,32], index: 3, kind: input, shape index: {}, may-alias: {3,14}]   ;;  %s2119_s4 = inlined_call_operand.hbm [shape: f32[32,512], index: 4, kind: input, shape index: {}]   ;;  %s2120_s5 = inlined_call_operand.hbm [shape: f32[128,512], index: 5, kind: input, shape index: {}]   ;;  %s2121_s6 = inlined_call_operand.vmem [shape: f32[1,512], index: 6, kind: input, shape index: {}]   ;;  %s2122_s7 = inlined_call_operand.hbm [shape: f32[128,512], index: 7, kind: input, shape index: {}]   ;;  %s2123_s8 = inlined_call_operand.hbm [shape: f32[128,512], index: 8, kind: input, shape index: {}]   ;;  %s2124_s9 = inlined_call_operand.vmem [shape: f32[1,512], index: 9, kind: input, shape index: {}]   ;;  %s2125_s10 = inlined_call_operand.hbm [shape: f32[128,128], index: 10, kind: input, shape index: {}]   ;;  %s2126_s11 = inlined_call_operand.vmem [shape: f32[1,128], index: 11, kind: input, shape index: {}]   ;;  %s2127_s12 = inlined_call_operand.hbm [shape: f32[8,8,128], index: 12, kind: output, shape index: {0}]   ;;  %s2128_s13 = inlined_call_operand.vmem [shape: f32[2,8,32], index: 13, kind: output, shape index: {1}, may-alias: {2,13}]   ;;  %s2129_s14 = inlined_call_operand.vmem [shape: f32[2,8,32], index: 14, kind: output, shape index: {2}, may-alias: {3,14}]  }
   0x1   :  { %21 = vsyncpa [#allocation8], 0 }
   0x2   :  { %22 = vsyncpa [#allocation11], 0 }
   0x3   :  { %23 = vsyncpa [#allocation6], 0  ;;  %s1786_s29 = smov [#allocation7]   ;;  %s1787_s15 = smov [#allocation10]  }
   0x4   :  { %s49_s30 = sshll.u32 %s1786_s29, 4  ;;  %s75_s16 = sshll.u32 %s1787_s15, 4  ;;  %s50_s30 = int_to_ptr.vmem [resolvable:$true] %s49_s30  ;;  %s1876_s16 = int_to_ptr.vmem [resolvable:$true] %s75_s16 }
   0x5   :  { %s1638_s19 = scalar_lea.hbm %s2120_s5, 8192 }
   0x6   :  { %p1639_p0 = scmp.ne.s32.totalorder %s2120_s5, %s1638_s19  ;;  %p1642_p1 = scmp.lt.u32.totalorder %s1638_s19, %s2120_s5 }
   0x8   :  { %p1644_p2 = pnand %p1642_p1, %p1639_p0 }
   0xa   :  { %1647 = shalt.err (!%p1644_p2)
}
   0xb   :  { %s1648_s24 = scalar_lea.vmem %s50_s30, 8192  ;;  %p1653_p4 = scmp.lt.s32.totalorder %s50_s30, %s50_s30 }
   0xc   :  { %p1649_p3 = scmp.ne.s32.totalorder %s50_s30, %s1648_s24  ;;  %p1654_p5 = scmp.lt.s32.totalorder %s1648_s24, %s1648_s24 }
   0xe   :  { %p1655_p6 = por %p1654_p5, %p1653_p4 }
  0x10   :  { %p1656_p7 = pnand %p1655_p6, %p1649_p3 }
  0x12   :  { %1659 = shalt.err (!%p1656_p7)
}
  0x13   :  { %s1788_s25 = smov 512   ;;  %s1789_s26 = smov 32  }
  0x14   :  { %55 = dma.hbm_to_vmem [thread:$0]  %s2120_s5, 8192, %s50_s30, [#allocation8], %s1788_s25, %s1788_s25, %s1789_s26  }
  0x15   :  { %s1660_s17 = scalar_lea.hbm %s2123_s8, 8192 }
  0x16   :  { %p1661_p8 = scmp.ne.s32.totalorder %s2123_s8, %s1660_s17  ;;  %p1664_p9 = scmp.lt.u32.totalorder %s1660_s17, %s2123_s8 }
  0x18   :  { %p1666_p10 = pnand %p1664_p9, %p1661_p8 }
  0x1a   :  { %1669 = shalt.err (!%p1666_p10)
}
  0x1b   :  { %s1670_s22 = scalar_lea.vmem %s1876_s16, 8192  ;;  %p1675_p12 = scmp.lt.s32.totalorder %s1876_s16, %s1876_s16 }
  0x1c   :  { %p1671_p11 = scmp.ne.s32.totalorder %s1876_s16, %s1670_s22  ;;  %p1676_p13 = scmp.lt.s32.totalorder %s1670_s22, %s1670_s22 }
  0x1e   :  { %p1677_p0 = por %p1676_p13, %p1675_p12 }
  0x20   :  { %p1678_p1 = pnand %p1677_p0, %p1671_p11 }
  0x22   :  { %1681 = shalt.err (!%p1678_p1)
}
  0x23   :  { %81 = dma.hbm_to_vmem [thread:$0]  %s2123_s8, 8192, %s1876_s16, [#allocation11], %s1788_s25, %s1788_s25, %s1789_s26  }
  0x24   :  { %s1790_s23 = smov [#allocation4]   ;;  %s1791_s27 = smov [#allocation9]  }
  0x25   :  { %s37_s24 = sshll.u32 %s1790_s23, 4  ;;  %s63_s28 = sshll.u32 %s1791_s27, 4  ;;  %s38_s24 = int_to_ptr.vmem [resolvable:$true] %s37_s24  ;;  %s1913_s28 = int_to_ptr.vmem [resolvable:$true] %s63_s28 }
  0x26   :  { %s1682_s17 = scalar_lea.hbm %s2119_s4, 2048 }
  0x27   :  { %p1683_p2 = scmp.ne.s32.totalorder %s2119_s4, %s1682_s17  ;;  %p1686_p3 = scmp.lt.u32.totalorder %s1682_s17, %s2119_s4 }
  0x29   :  { %p1688_p4 = pnand %p1686_p3, %p1683_p2 }
  0x2b   :  { %1691 = shalt.err (!%p1688_p4)
}
  0x2c   :  { %s1692_s8 = scalar_lea.vmem %s38_s24, 2048  ;;  %p1697_p6 = scmp.lt.s32.totalorder %s38_s24, %s38_s24 }
  0x2d   :  { %p1693_p5 = scmp.ne.s32.totalorder %s38_s24, %s1692_s8  ;;  %p1698_p7 = scmp.lt.s32.totalorder %s1692_s8, %s1692_s8 }
  0x2f   :  { %p1699_p8 = por %p1698_p7, %p1697_p6 }
  0x31   :  { %p1700_p9 = pnand %p1699_p8, %p1693_p5 }
  0x33   :  { %1703 = shalt.err (!%p1700_p9)
}
  0x34   :  { %43 = dma.hbm_to_vmem [thread:$0]  %s2119_s4, 2048, %s38_s24, [#allocation5], %s1788_s25, %s1788_s25, %s1789_s26  }
  0x35   :  { %s1704_s23 = scalar_lea.hbm %s2122_s7, 8192 }
  0x36   :  { %p1705_p10 = scmp.ne.s32.totalorder %s2122_s7, %s1704_s23  ;;  %p1708_p11 = scmp.lt.u32.totalorder %s1704_s23, %s2122_s7 }
  0x38   :  { %p1710_p12 = pnand %p1708_p11, %p1705_p10 }
  0x3a   :  { %1713 = shalt.err (!%p1710_p12)
}
  0x3b   :  { %s1714_s18 = scalar_lea.vmem %s1913_s28, 8192  ;;  %p1719_p0 = scmp.lt.s32.totalorder %s1913_s28, %s1913_s28 }
  0x3c   :  { %p1715_p13 = scmp.ne.s32.totalorder %s1913_s28, %s1714_s18  ;;  %p1720_p1 = scmp.lt.s32.totalorder %s1714_s18, %s1714_s18 }
  0x3e   :  { %p1721_p2 = por %p1720_p1, %p1719_p0 }
  0x40   :  { %p1722_p3 = pnand %p1721_p2, %p1715_p13 }
  0x42   :  { %1725 = shalt.err (!%p1722_p3)
}
  0x43   :  { %69 = dma.hbm_to_vmem [thread:$0]  %s2122_s7, 8192, %s1913_s28, [#allocation8], %s1788_s25, %s1788_s25, %s1789_s26  }
  0x44   :  { %s1792_s19 = smov [#allocation12]   ;;  %s1726_s16 = scalar_lea.hbm %s2125_s10, 2048 }
  0x45   :  { %s89_s20 = sshll.u32 %s1792_s19, 4  ;;  %p1727_p4 = scmp.ne.s32.totalorder %s2125_s10, %s1726_s16  ;;  %s90_s20 = int_to_ptr.vmem [resolvable:$true] %s89_s20 }
  0x46   :  { %p1730_p5 = scmp.lt.u32.totalorder %s1726_s16, %s2125_s10 }
  0x48   :  { %p1732_p6 = pnand %p1730_p5, %p1727_p4 }
  0x4a   :  { %1735 = shalt.err (!%p1732_p6)
}
  0x4b   :  { %s1736_s27 = scalar_lea.vmem %s90_s20, 2048  ;;  %p1741_p8 = scmp.lt.s32.totalorder %s90_s20, %s90_s20 }
  0x4c   :  { %p1737_p7 = scmp.ne.s32.totalorder %s90_s20, %s1736_s27  ;;  %p1742_p9 = scmp.lt.s32.totalorder %s1736_s27, %s1736_s27 }
  0x4e   :  { %p1743_p10 = por %p1742_p9, %p1741_p8 }
  0x50   :  { %p1744_p11 = pnand %p1743_p10, %p1737_p7 }
  0x52   :  { %1747 = shalt.err (!%p1744_p11)
}
  0x53   :  { %s1793_s7 = smov 128   ;;  %s1794_s25 = smov 8  }
  0x54   :  { %95 = dma.hbm_to_vmem [thread:$0]  %s2125_s10, 2048, %s90_s20, [#allocation11], %s1793_s7, %s1793_s7, %s1794_s25  }
  0x55   :  { %1774 = dma.done.wait [#allocation5], 2048  }
  0x56   :  { %1775 = vsyncadd [#allocation5], 4294965248 }
  0x57   :  { %1776 = dma.done.wait [#allocation8], 16384  }
  0x58   :  { %1777 = vsyncadd [#allocation8], 4294950912 }
  0x59   :  { %1778 = dma.done.wait [#allocation11], 10240  }
  0x5a   :  { %1779 = vsyncadd [#allocation11], 4294957056  ;;  %v130_v0 = vlaneseq  ;;  %v1795_v1 = vmov 0.0   ;;  %vm118_vm0 = vcmask 261120   ;;  %v132_v8 = vld [vmem:[%s2121_s6] sm:$0xf] }
  0x5b   :  { %113 = vst [vmem:[#allocation2] sm:$0xff] %v1795_v1  ;;  %114 = vst [vmem:[#allocation2 + $0x8] sm:$0xff] %v1795_v1  ;;  %v154_v9 = vld [vmem:[%s2124_s9] sm:$0xf]  ;;  %v1252_v17 = vld [vmem:[%s2117_s2 + $0x8] sm:$0xff] }
  0x5c   :  { %115 = vst [vmem:[#allocation3] sm:$0xff] %v1795_v1  ;;  %116 = vst [vmem:[#allocation3 + $0x8] sm:$0xff] %v1795_v1  ;;  %v1965_v2 = vand.u32 127, %v130_v0  ;;  %v135_v3 = vshrl.u32 %v130_v0, 7  ;;  %v1976_v10 = vld [vmem:[%s2126_s11] ss:$0 sm:$0xff] }
  0x5d   :  { %v117_v15 = vld [vmem:[%s2117_s2] sm:$0xff]  ;;  %125 = vst.msk [vmem:[#allocation2 + $0x8] sm:$0xff] %vm118_vm0, %v1252_v17  ;;  %v1253_v22 = vld [vmem:[%s2118_s3 + $0x8] sm:$0xff]  ;;  %s2010_s2 = smov 0  }
  0x5e   :  { %v136_v4 = vsub.s32 0, %v135_v3  ;;  %v140_v5 = vsub.s32 1, %v135_v3  ;;  %v144_v6 = vsub.s32 2, %v135_v3  ;;  %v148_v7 = vsub.s32 3, %v135_v3  ;;  %v120_v16 = vld [vmem:[%s2118_s3] sm:$0xff]  ;;  %119 = vst.msk [vmem:[#allocation2] sm:$0xff] %vm118_vm0, %v117_v15 }
  0x5f   :  { %121 = vst.msk [vmem:[#allocation3] sm:$0xff] %vm118_vm0, %v120_v16  ;;  %129 = vst.msk [vmem:[#allocation3 + $0x8] sm:$0xff] %vm118_vm0, %v1253_v22 }
  0x60   :  { %v1978_v11 = vrot.slane %v132_v8, %v136_v4  ;;  %v1980_v12 = vrot.slane %v132_v8, %v140_v5  ;;  %v1982_v13 = vrot.slane %v132_v8, %v144_v6  ;;  %v1984_v14 = vrot.slane %v132_v8, %v148_v7 }
  0x61   :  { %v1995_v18 = vrot.slane %v154_v9, %v136_v4  ;;  %v1997_v19 = vrot.slane %v154_v9, %v140_v5  ;;  %v1999_v20 = vrot.slane %v154_v9, %v144_v6  ;;  %v2001_v21 = vrot.slane %v154_v9, %v148_v7 }
  0x62 LB: > { %v198_v23 = vld [vmem:[%s2116_s1] sm:$0xff]  ;;  %v199_v24 = vld [vmem:[%s2116_s1 + $0x8] sm:$0xff]  ;;  %v200_v25 = vld [vmem:[%s2116_s1 + $0x10] sm:$0xff]  ;;  %v1796_v26 = vmov 0   ;;  %v1797_v27 = vmov 0.0|0.0   ;;  %s1255_s28 = sshll.u32 %s1784_s2, 3  ;;  %s1784_s2 = sphi %s2010_s2, %s188_s2  }
  0x63   : > { %1605 = vset.pattern.permute.xlu0 %v1796_v26  ;;  %1336 = vmatprep.subr.bf16.mxu0 %v1797_v27  ;;  %v1337_v28 = vpack.c.bf16 %v199_v24, %v198_v23  ;;  %v201_v29 = vld [vmem:[%s2116_s1 + $0x18] sm:$0xff]  ;;  %v1798_v30 = vmov 0.0   ;;  %s190_s15 = scalar_lea.vmem %s2115_s0, %s1255_s28  ;;  %vm1799_vm1 = vmmov 0   ;;  %v294_v36 = vld [vmem:[#allocation7 + $0x8] sm:$0xff]  ;;  %v293_v39 = vld [vmem:[#allocation7] sm:$0xff]  ;;  %s1204_s17 = scalar_lea.vmem [#allocation13], %s1255_s28 }
  0x64   : > { %421 = vmatprep.mubr.f32.mxu1 %v1798_v30  ;;  %v1340_v31 = vpack.c.bf16 %v201_v29, %v200_v25  ;;  %v191_v32 = vld [vmem:[%s190_s15] sm:$0xff]  ;;  %1298 = vmatprep.mubr.msk.f32.mxu0 %vm1799_vm1, %v1798_v30  ;;  %v296_v33 = vld [vmem:[#allocation7 + $0x18] sm:$0xff]  ;;  %v298_v37 = vld [vmem:[#allocation7 + $0x28] sm:$0xff]  ;;  %s188_s2 = sadd.s32 1, %s1784_s2  }
  0x65   : > { %1338 = vmatpush3.bf16.msra.mxu0 %v1337_v28  ;;  %193 = vperm.xlu0 %1605, %v191_v32   ;;  %v300_v34 = vld [vmem:[#allocation7 + $0x38] sm:$0xff]  ;;  %v1342_v38 = vpack.c.bf16 %v298_v37, %v294_v36  ;;  %v297_v40 = vld [vmem:[#allocation7 + $0x20] sm:$0xff]  ;;  %v302_v42 = vld [vmem:[#allocation7 + $0x48] sm:$0xff]  ;;  %p185_p12 = scmp.ge.s32.totalorder %s188_s2, 8  }
  0x66   : > { %1339 = vmatprep.subr.bf16.mxu0 %v1797_v27  ;;  %v1374_v35 = vpack.c.bf16 %v300_v34, %v296_v33  ;;  %v1344_v41 = vpack.c.bf16 %v297_v40, %v293_v39  ;;  %v306_v43 = vld [vmem:[#allocation7 + $0x68] sm:$0xff]  ;;  %v301_v45 = vld [vmem:[#allocation7 + $0x40] sm:$0xff]  ;;  %v295_v33 = vld [vmem:[#allocation7 + $0x10] sm:$0xff]  ;;  %s1800_s9 = smov (%p185_p12), [#allocation13]  }
  0x67   : > { %1343 = vmatprep.subr.bf16.mxu1 %v1342_v38  ;;  %v1346_v44 = vpack.c.bf16 %v306_v43, %v302_v42  ;;  %v305_v46 = vld [vmem:[#allocation7 + $0x60] sm:$0xff]  ;;  %v310_v48 = vld [vmem:[#allocation7 + $0x88] sm:$0xff]  ;;  %v299_v34 = vld [vmem:[#allocation7 + $0x30] sm:$0xff]  ;;  %s1221_s0 = sshll.u32 (%p185_p12), %s1800_s9, 4  ;;  %s1222_s0 = int_to_ptr.vmem [resolvable:$true] %s1221_s0 }
  0x68   : > { %1345 = vmatpush1.bf16.msra.mxu1 %v1344_v41  ;;  %v1348_v47 = vpack.c.bf16 %v305_v46, %v301_v45  ;;  %v314_v49 = vld [vmem:[#allocation7 + $0xa8] sm:$0xff]  ;;  %v309_v51 = vld [vmem:[#allocation7 + $0x80] sm:$0xff]  ;;  %v308_v36 = vld [vmem:[#allocation7 + $0x78] sm:$0xff]  ;;  %v1376_v38 = vpack.c.bf16 %v299_v34, %v295_v33  ;;  %s1748_s11 = scalar_lea.vmem (%p185_p12), %s1222_s0, 1024  ;;  %p1753_p0 = scmp.lt.s32.totalorder (%p185_p12), %s1222_s0, %s1222_s0 }
  0x69   : > { %1341 = vmatpush3.bf16.msra.mxu0 %v1340_v31  ;;  %1347 = vmatprep.subr.bf16.mxu1 %v1346_v44  ;;  %v1350_v50 = vpack.c.bf16 %v314_v49, %v310_v48  ;;  %v313_v52 = vld [vmem:[#allocation7 + $0xa0] sm:$0xff]  ;;  %v318_v54 = vld [vmem:[#allocation7 + $0xc8] sm:$0xff]  ;;  %v303_v40 = vld [vmem:[#allocation7 + $0x50] sm:$0xff]  ;;  %p1749_p13 = scmp.ne.s32.totalorder (%p185_p12), %s1222_s0, %s1748_s11  ;;  %p1754_p1 = scmp.lt.s32.totalorder (%p185_p12), %s1748_s11, %s1748_s11 }
  0x6a   : > { %1375 = vmatprep.subr.bf16.mxu0 %v1374_v35  ;;  %v1352_v53 = vpack.c.bf16 %v313_v52, %v309_v51  ;;  %v322_v55 = vld [vmem:[#allocation7 + $0xe8] sm:$0xff]  ;;  %v317_v57 = vld [vmem:[#allocation7 + $0xc0] sm:$0xff]  ;;  %v304_v35 = vld [vmem:[#allocation7 + $0x58] sm:$0xff] }
  0x6b   : > { %v1354_v56 = vpack.c.bf16 %v322_v55, %v318_v54  ;;  %v321_v58 = vld [vmem:[#allocation7 + $0xe0] sm:$0xff]  ;;  %v326_v60 = vld [vmem:[#allocation7 + $0x108] sm:$0xff]  ;;  %v1378_v39 = vpack.c.bf16 %v308_v36, %v304_v35  ;;  %v307_v41 = vld [vmem:[#allocation7 + $0x70] sm:$0xff]  ;;  %p1755_p2 = por (%p185_p12), %p1754_p1, %p1753_p0 }
  0x6c   : > { %1349 = vmatpush1.bf16.msra.mxu1 %v1348_v47  ;;  %v1356_v59 = vpack.c.bf16 %v321_v58, %v317_v57  ;;  %v330_v61 = vld [vmem:[#allocation7 + $0x128] sm:$0xff]  ;;  %v325_v63 = vld [vmem:[#allocation7 + $0x100] sm:$0xff]  ;;  %v312_v43 = vld [vmem:[#allocation7 + $0x98] sm:$0xff]  ;;  %v1380_v45 = vpack.c.bf16 %v307_v41, %v303_v40 }
  0x6d   : > { %1351 = vmatprep.subr.bf16.mxu1 %v1350_v50  ;;  %v1358_v62 = vpack.c.bf16 %v330_v61, %v326_v60  ;;  %v329_v0 = vld [vmem:[#allocation7 + $0x120] sm:$0xff]  ;;  %v334_v3 = vld [vmem:[#allocation7 + $0x148] sm:$0xff]  ;;  %v316_v44 = vld [vmem:[#allocation7 + $0xb8] sm:$0xff]  ;;  %p1756_p3 = pnand (%p185_p12), %p1755_p2, %p1749_p13 }
  0x6e   : > { %v1360_v1 = vpack.c.bf16 %v329_v0, %v325_v63  ;;  %v338_v4 = vld [vmem:[#allocation7 + $0x168] sm:$0xff]  ;;  %v333_v6 = vld [vmem:[#allocation7 + $0x140] sm:$0xff]  ;;  %v1382_v46 = vpack.c.bf16 %v316_v44, %v312_v43  ;;  %v311_v47 = vld [vmem:[#allocation7 + $0x90] sm:$0xff] }
  0x6f   : > { %v1362_v5 = vpack.c.bf16 %v338_v4, %v334_v3  ;;  %v337_v7 = vld [vmem:[#allocation7 + $0x160] sm:$0xff]  ;;  %v342_v9 = vld [vmem:[#allocation7 + $0x188] sm:$0xff]  ;;  %v315_v48 = vld [vmem:[#allocation7 + $0xb0] sm:$0xff] }
  0x70   : > { %1353 = vmatpush1.bf16.msra.mxu1 %v1352_v53  ;;  %v1364_v8 = vpack.c.bf16 %v337_v7, %v333_v6  ;;  %v346_v15 = vld [vmem:[#allocation7 + $0x1a8] sm:$0xff]  ;;  %v341_v17 = vld [vmem:[#allocation7 + $0x180] sm:$0xff]  ;;  %v320_v49 = vld [vmem:[#allocation7 + $0xd8] sm:$0xff]  ;;  %v1384_v51 = vpack.c.bf16 %v315_v48, %v311_v47 }
  0x71   : > { %1355 = vmatprep.subr.bf16.mxu1 %v1354_v56  ;;  %v1366_v16 = vpack.c.bf16 %v346_v15, %v342_v9  ;;  %v345_v22 = vld [vmem:[#allocation7 + $0x1a0] sm:$0xff]  ;;  %v350_v24 = vld [vmem:[#allocation7 + $0x1c8] sm:$0xff]  ;;  %v324_v50 = vld [vmem:[#allocation7 + $0xf8] sm:$0xff] }
  0x72   : > { %v1368_v23 = vpack.c.bf16 %v345_v22, %v341_v17  ;;  %v354_v25 = vld [vmem:[#allocation7 + $0x1e8] sm:$0xff]  ;;  %v349_v28 = vld [vmem:[#allocation7 + $0x1c0] sm:$0xff]  ;;  %v1386_v52 = vpack.c.bf16 %v324_v50, %v320_v49  ;;  %v319_v53 = vld [vmem:[#allocation7 + $0xd0] sm:$0xff] }
  0x73   : > { %v1370_v26 = vpack.c.bf16 %v354_v25, %v350_v24  ;;  %v353_v29 = vld [vmem:[#allocation7 + $0x1e0] sm:$0xff]  ;;  %v323_v54 = vld [vmem:[#allocation7 + $0xf0] sm:$0xff]  ;;  %v328_v55 = vld [vmem:[#allocation7 + $0x118] sm:$0xff] }
  0x74   : > { %1357 = vmatpush1.bf16.msra.mxu1 %v1356_v59  ;;  %v1372_v31 = vpack.c.bf16 %v353_v29, %v349_v28  ;;  %v2038_v32 = vld [vmem:[#allocation2] sm:$0xff]  ;;  %v332_v56 = vld [vmem:[#allocation7 + $0x138] sm:$0xff]  ;;  %v1388_v57 = vpack.c.bf16 %v323_v54, %v319_v53  ;;  %v327_v59 = vld [vmem:[#allocation7 + $0x110] sm:$0xff] }
  0x75   : > { %1359 = vmatprep.subr.bf16.mxu1 %v1358_v62  ;;  %v1390_v58 = vpack.c.bf16 %v332_v56, %v328_v55  ;;  %v331_v60 = vld [vmem:[#allocation7 + $0x130] sm:$0xff]  ;;  %v336_v61 = vld [vmem:[#allocation7 + $0x158] sm:$0xff]  ;;  %v278_v25 = vld [vmem:[#allocation4 + $0x8] sm:$0xff] }
  0x76   : > { %v340_v62 = vld [vmem:[#allocation7 + $0x178] sm:$0xff]  ;;  %v1392_v63 = vpack.c.bf16 %v331_v60, %v327_v59  ;;  %v339_v3 = vld [vmem:[#allocation7 + $0x170] sm:$0xff]  ;;  %v281_v33 = vld [vmem:[#allocation4 + $0x20] sm:$0xff] }
  0x77   : > { %v1394_v0 = vpack.c.bf16 %v340_v62, %v336_v61  ;;  %v344_v4 = vld [vmem:[#allocation7 + $0x198] sm:$0xff]  ;;  %v347_v9 = vld [vmem:[#allocation7 + $0x1b0] sm:$0xff]  ;;  %v286_v34 = vld [vmem:[#allocation4 + $0x48] sm:$0xff] }
  0x78   : > { %1361 = vmatpush1.bf16.msra.mxu1 %v1360_v1  ;;  %v335_v1 = vld [vmem:[#allocation7 + $0x150] sm:$0xff]  ;;  %v352_v15 = vld [vmem:[#allocation7 + $0x1d8] sm:$0xff]  ;;  %v290_v35 = vld [vmem:[#allocation4 + $0x68] sm:$0xff] }
  0x79   : > { %1363 = vmatprep.subr.bf16.mxu1 %v1362_v5  ;;  %v348_v5 = vld [vmem:[#allocation7 + $0x1b8] sm:$0xff]  ;;  %v1396_v6 = vpack.c.bf16 %v339_v3, %v335_v1  ;;  %v355_v24 = vld [vmem:[#allocation7 + $0x1f0] sm:$0xff]  ;;  %v741_v44 = vld [vmem:[#allocation10 + $0x8] sm:$0xff] }
  0x7a   : > { %v1398_v7 = vpack.c.bf16 %v348_v5, %v344_v4  ;;  %v280_v41 = vld [vmem:[#allocation4 + $0x18] sm:$0xff]  ;;  %v740_v47 = vld [vmem:[#allocation10] sm:$0xff]  ;;  %v749_v50 = vld [vmem:[#allocation10 + $0x48] sm:$0xff] }
  0x7b   : > { %v744_v48 = vld [vmem:[#allocation10 + $0x20] sm:$0xff]  ;;  %v757_v55 = vld [vmem:[#allocation10 + $0x88] sm:$0xff] }
  0x7c   : > { %1365 = vmatpush1.bf16.msra.mxu1 %v1364_v8  ;;  %v343_v8 = vld [vmem:[#allocation7 + $0x190] sm:$0xff]  ;;  %v1424_v49 = vpack.c.bf16 %v744_v48, %v740_v47  ;;  %v752_v53 = vld [vmem:[#allocation10 + $0x60] sm:$0xff]  ;;  %v761_v56 = vld [vmem:[#allocation10 + $0xa8] sm:$0xff] }
  0x7d   : > { %1367 = vmatprep.subr.bf16.mxu1 %v1366_v16  ;;  %v356_v16 = vld [vmem:[#allocation7 + $0x1f8] sm:$0xff]  ;;  %v1400_v17 = vpack.c.bf16 %v347_v9, %v343_v8  ;;  %v760_v59 = vld [vmem:[#allocation10 + $0xa0] sm:$0xff]  ;;  %v765_v61 = vld [vmem:[#allocation10 + $0xc8] sm:$0xff] }
  0x7e   : > { %v1402_v22 = vpack.c.bf16 %v356_v16, %v352_v15  ;;  %v769_v62 = vld [vmem:[#allocation10 + $0xe8] sm:$0xff]  ;;  %v768_v1 = vld [vmem:[#allocation10 + $0xe0] sm:$0xff]  ;;  %v288_v8 = vld [vmem:[#allocation4 + $0x58] sm:$0xff] }
  0x7f   : > { %v292_v9 = vld [vmem:[#allocation4 + $0x78] sm:$0xff] }
  0x80   : > { %1369 = vmatpush1.bf16.msra.mxu1 %v1368_v23  ;;  %v351_v23 = vld [vmem:[#allocation7 + $0x1d0] sm:$0xff]  ;;  %v1418_v16 = vpack.c.bf16 %v292_v9, %v288_v8  ;;  %v771_v47 = vld [vmem:[#allocation10 + $0xf8] sm:$0xff]  ;;  %v780_v8 = vld [vmem:[#allocation10 + $0x140] sm:$0xff] }
  0x81   : > { %1371 = vmatprep.subr.bf16.mxu1 %v1370_v26  ;;  %v282_v26 = vld [vmem:[#allocation4 + $0x28] sm:$0xff]  ;;  %v1404_v28 = vpack.c.bf16 %v355_v24, %v351_v23  ;;  %v743_v24 = vld [vmem:[#allocation10 + $0x18] sm:$0xff]  ;;  %v784_v9 = vld [vmem:[#allocation10 + $0x160] sm:$0xff] }
  0x82   : > { %v1406_v29 = vpack.c.bf16 %v282_v26, %v278_v25  ;;  %v747_v25 = vld [vmem:[#allocation10 + $0x38] sm:$0xff] }
  0x84   : > { %1373 = vmatpush1.bf16.msra.mxu1 %v1372_v31  ;;  %v277_v31 = vld [vmem:[#allocation4] sm:$0xff] }
  0x85   : > { %v1408_v36 = vpack.c.bf16 %v281_v33, %v277_v31  ;;  %v742_v31 = vld [vmem:[#allocation10 + $0x10] sm:$0xff] }
  0x86   : > { %v746_v33 = vld [vmem:[#allocation10 + $0x30] sm:$0xff] }
  0x87   : > { %422 = vmatmul.mubr.f32.vlgmr.msra.gmra.mrb[0].mxu1 %v2038_v32 }
  0x88   : > { %868 = vmatprep.mubr.f32.mxu1 %v1798_v30 }
  0xe4   : > { %v194_v37 = vpop.permute.xlu0 %193 }
  0xe5   : > { %vm195_vm2 = vcmp.eq.s32.totalorder %v1965_v2, %v194_v37  ;;  %v1410_v37 = vpack.c.bf16 %v290_v35, %v286_v34  ;;  %v751_v34 = vld [vmem:[#allocation10 + $0x58] sm:$0xff] }
  0xe6   : > { %v1256_v42 = vsel %vm195_vm2, 1.0, %v1798_v30  ;;  %v755_v35 = vld [vmem:[#allocation10 + $0x78] sm:$0xff] }
  0xe7   : > { %1299 = vmatmul.mubr.msk.f32.vlgmr.msra.gmra.mrb[0].mxu0 %vm118_vm0, %v1256_v42  ;;  %v284_v42 = vld [vmem:[#allocation4 + $0x38] sm:$0xff] }
  0xe8   : > { %1377 = vmatpush1.bf16.msra.mxu0 %v1376_v38  ;;  %492 = vmatprep.mubr.f32.mxu0 %v1798_v30  ;;  %v285_v38 = vld [vmem:[#allocation4 + $0x40] sm:$0xff]  ;;  %v1414_v43 = vpack.c.bf16 %v284_v42, %v280_v41  ;;  %v763_v41 = vld [vmem:[#allocation10 + $0xb8] sm:$0xff] }
  0xe9   : > { %1379 = vmatprep.subr.bf16.mxu0 %v1378_v39  ;;  %v289_v39 = vld [vmem:[#allocation4 + $0x60] sm:$0xff] }
  0xea   : > { %v1412_v40 = vpack.c.bf16 %v289_v39, %v285_v38  ;;  %v750_v38 = vld [vmem:[#allocation10 + $0x50] sm:$0xff] }
  0xeb   : > { %v754_v39 = vld [vmem:[#allocation10 + $0x70] sm:$0xff] }
  0xec   : > { %1381 = vmatpush1.bf16.msra.mxu0 %v1380_v45  ;;  %v745_v45 = vld [vmem:[#allocation10 + $0x28] sm:$0xff]  ;;  %v1460_v42 = vpack.c.bf16 %v754_v39, %v750_v38 }
  0xed   : > { %1383 = vmatprep.subr.bf16.mxu0 %v1382_v46  ;;  %v1422_v46 = vpack.c.bf16 %v745_v45, %v741_v44  ;;  %v758_v44 = vld [vmem:[#allocation10 + $0x90] sm:$0xff]  ;;  %v797_v39 = vld [vmem:[#allocation10 + $0x1c8] sm:$0xff] }
  0xee   : > { %v762_v45 = vld [vmem:[#allocation10 + $0xb0] sm:$0xff] }
  0xef   : > { %1423 = vmatprep.subr.bf16.mxu1 %v1422_v46  ;;  %v767_v46 = vld [vmem:[#allocation10 + $0xd8] sm:$0xff]  ;;  %v1464_v48 = vpack.c.bf16 %v762_v45, %v758_v44  ;;  %v796_v44 = vld [vmem:[#allocation10 + $0x1c0] sm:$0xff] }
  0xf0   : > { %1385 = vmatpush1.bf16.msra.mxu0 %v1384_v51  ;;  %v753_v51 = vld [vmem:[#allocation10 + $0x68] sm:$0xff]  ;;  %1425 = vmatpush1.bf16.msra.mxu1 %v1424_v49  ;;  %v1466_v49 = vpack.c.bf16 %v771_v47, %v767_v46  ;;  %v800_v45 = vld [vmem:[#allocation10 + $0x1e0] sm:$0xff] }
  0xf1   : > { %1387 = vmatprep.subr.bf16.mxu0 %v1386_v52  ;;  %v748_v52 = vld [vmem:[#allocation10 + $0x40] sm:$0xff]  ;;  %v1452_v47 = vpack.c.bf16 %v800_v45, %v796_v44 }
  0xf2   : > { %v1428_v54 = vpack.c.bf16 %v752_v53, %v748_v52  ;;  %v773_v52 = vld [vmem:[#allocation10 + $0x108] sm:$0xff]  ;;  %v704_v44 = vld [vmem:[#allocation9 + $0xe0] sm:$0xff] }
  0xf3   : > { %v777_v53 = vld [vmem:[#allocation10 + $0x128] sm:$0xff] }
  0xf4   : > { %1389 = vmatpush1.bf16.msra.mxu0 %v1388_v57  ;;  %v1430_v57 = vpack.c.bf16 %v761_v56, %v757_v55  ;;  %v1438_v55 = vpack.c.bf16 %v777_v53, %v773_v52  ;;  %v779_v56 = vld [vmem:[#allocation10 + $0x138] sm:$0xff] }
  0xf5   : > { %1391 = vmatprep.subr.bf16.mxu0 %v1390_v58  ;;  %v756_v58 = vld [vmem:[#allocation10 + $0x80] sm:$0xff]  ;;  %v679_v52 = vld [vmem:[#allocation9 + $0x18] sm:$0xff] }
  0xf6   : > { %v1432_v60 = vpack.c.bf16 %v760_v59, %v756_v58  ;;  %v776_v58 = vld [vmem:[#allocation10 + $0x120] sm:$0xff] }
  0xf8   : > { %1393 = vmatpush1.bf16.msra.mxu0 %v1392_v63  ;;  %v1434_v63 = vpack.c.bf16 %v769_v62, %v765_v61  ;;  %v774_v61 = vld [vmem:[#allocation10 + $0x110] sm:$0xff] }
  0xf9   : > { %1395 = vmatprep.subr.bf16.mxu0 %v1394_v0  ;;  %v764_v0 = vld [vmem:[#allocation10 + $0xc0] sm:$0xff]  ;;  %v778_v62 = vld [vmem:[#allocation10 + $0x130] sm:$0xff] }
  0xfa   : > { %v1436_v3 = vpack.c.bf16 %v768_v1, %v764_v0  ;;  %v781_v0 = vld [vmem:[#allocation10 + $0x148] sm:$0xff] }
  0xfb   : > { %v785_v1 = vld [vmem:[#allocation10 + $0x168] sm:$0xff] }
  0xfc   : > { %1397 = vmatpush1.bf16.msra.mxu0 %v1396_v6  ;;  %v279_v6 = vld [vmem:[#allocation4 + $0x10] sm:$0xff] }
  0xfd   : > { %1399 = vmatprep.subr.bf16.mxu0 %v1398_v7  ;;  %v283_v7 = vld [vmem:[#allocation4 + $0x30] sm:$0xff] }
  0xfe   : > { %v1416_v15 = vpack.c.bf16 %v283_v7, %v279_v6  ;;  %v1442_v6 = vpack.c.bf16 %v785_v1, %v781_v0  ;;  %v787_v7 = vld [vmem:[#allocation10 + $0x178] sm:$0xff]  ;;  %v689_v0 = vld [vmem:[#allocation9 + $0x68] sm:$0xff] }
  0xff   : > { %v687_v1 = vld [vmem:[#allocation9 + $0x58] sm:$0xff] }
 0x100   : > { %1401 = vmatpush1.bf16.msra.mxu0 %v1400_v17  ;;  %v287_v17 = vld [vmem:[#allocation4 + $0x50] sm:$0xff] }
 0x101   : > { %1403 = vmatprep.subr.bf16.mxu0 %v1402_v22  ;;  %v291_v22 = vld [vmem:[#allocation4 + $0x70] sm:$0xff] }
 0x104   : > { %1405 = vmatpush1.bf16.msra.mxu0 %v1404_v28  ;;  %v1420_v28 = vpack.c.bf16 %v291_v22, %v287_v17  ;;  %v782_v17 = vld [vmem:[#allocation10 + $0x150] sm:$0xff] }
 0x105   : > { %1407 = vmatprep.subr.bf16.mxu0 %v1406_v29  ;;  %v1454_v29 = vpack.c.bf16 %v747_v25, %v743_v24  ;;  %v786_v22 = vld [vmem:[#allocation10 + $0x170] sm:$0xff]  ;;  %v789_v24 = vld [vmem:[#allocation10 + $0x188] sm:$0xff] }
 0x106   : > { %v793_v25 = vld [vmem:[#allocation10 + $0x1a8] sm:$0xff] }
 0x107   : > { %493 = vmatmul.mubr.f32.vlgmr.msra.gmra.mrb[2].mxu0 %v2038_v32  ;;  %v1426_v32 = vpack.c.bf16 %v753_v51, %v749_v50  ;;  %v766_v50 = vld [vmem:[#allocation10 + $0xd0] sm:$0xff] }
 0x108   : > { %1409 = vmatpush1.bf16.msra.mxu0 %v1408_v36  ;;  %566 = vmatprep.mubr.f32.mxu0 %v1798_v30  ;;  %v1456_v36 = vpack.c.bf16 %v746_v33, %v742_v31  ;;  %v770_v51 = vld [vmem:[#allocation10 + $0xf0] sm:$0xff]  ;;  %v788_v31 = vld [vmem:[#allocation10 + $0x180] sm:$0xff] }
 0x109   : > { %1411 = vmatprep.subr.bf16.mxu0 %v1410_v37  ;;  %1427 = vmatprep.subr.bf16.mxu1 %v1426_v32  ;;  %v1458_v37 = vpack.c.bf16 %v755_v35, %v751_v34  ;;  %v1468_v32 = vpack.c.bf16 %v770_v51, %v766_v50  ;;  %v792_v33 = vld [vmem:[#allocation10 + $0x1a0] sm:$0xff]  ;;  %v677_v51 = vld [vmem:[#allocation9 + $0x8] sm:$0xff] }
 0x10a   : > { %1429 = vmatpush1.bf16.msra.mxu1 %v1428_v54  ;;  %v775_v54 = vld [vmem:[#allocation10 + $0x118] sm:$0xff]  ;;  %v1448_v35 = vpack.c.bf16 %v792_v33, %v788_v31  ;;  %v696_v31 = vld [vmem:[#allocation9 + $0xa0] sm:$0xff] }
 0x10b   : > { %1431 = vmatprep.subr.bf16.mxu1 %v1430_v57  ;;  %v772_v57 = vld [vmem:[#allocation10 + $0x100] sm:$0xff]  ;;  %v1470_v59 = vpack.c.bf16 %v779_v56, %v775_v54  ;;  %v683_v54 = vld [vmem:[#allocation9 + $0x38] sm:$0xff] }
 0x10c   : > { %1413 = vmatpush1.bf16.msra.mxu0 %v1412_v40  ;;  %v759_v40 = vld [vmem:[#allocation10 + $0x98] sm:$0xff]  ;;  %v680_v56 = vld [vmem:[#allocation9 + $0x20] sm:$0xff] }
 0x10d   : > { %1415 = vmatprep.subr.bf16.mxu0 %v1414_v43  ;;  %v1462_v43 = vpack.c.bf16 %v763_v41, %v759_v40  ;;  %v801_v40 = vld [vmem:[#allocation10 + $0x1e8] sm:$0xff]  ;;  %v799_v41 = vld [vmem:[#allocation10 + $0x1d8] sm:$0xff] }
 0x10e   : > { %1433 = vmatpush1.bf16.msra.mxu1 %v1432_v60  ;;  %v1440_v60 = vpack.c.bf16 %v776_v58, %v772_v57  ;;  %v1518_v57 = vpack.c.bf16 %v683_v54, %v679_v52  ;;  %v708_v54 = vld [vmem:[#allocation9 + $0x100] sm:$0xff] }
 0x10f   : > { %1435 = vmatprep.subr.bf16.mxu1 %v1434_v63  ;;  %v1472_v63 = vpack.c.bf16 %v778_v62, %v774_v61  ;;  %v674_v61 = vld [vmem:[#allocation2 + $0x8] sm:$0xff] }
 0x112   : > { %1437 = vmatpush1.bf16.msra.mxu1 %v1436_v3  ;;  %v783_v3 = vld [vmem:[#allocation10 + $0x158] sm:$0xff] }
 0x113   : > { %1439 = vmatprep.subr.bf16.mxu1 %v1438_v55  ;;  %v676_v55 = vld [vmem:[#allocation9] sm:$0xff] }
 0x114   : > { %v1488_v58 = vpack.c.bf16 %v680_v56, %v676_v55  ;;  %v712_v55 = vld [vmem:[#allocation9 + $0x120] sm:$0xff] }
 0x116   : > { %1441 = vmatpush1.bf16.msra.mxu1 %v1440_v60  ;;  %v682_v60 = vld [vmem:[#allocation9 + $0x30] sm:$0xff] }
 0x117   : > { %1443 = vmatprep.subr.bf16.mxu1 %v1442_v6  ;;  %v691_v6 = vld [vmem:[#allocation9 + $0x78] sm:$0xff] }
 0x15a   : > { %v2048_v4 = vpop.f32.mrb[0].mxu1 }
 0x15b   : > { %v2050_v5 = vpop.f32.mrb[1].mxu1 }
 0x1ba   : > { %v271_v23 = vpop.f32.mrb[0].mxu0 }
 0x1bb   : > { %v1300_v26 = vpop.f32.mrb[1].mxu0  ;;  %1258 = vmatmul.mubr.msk.f32.vlgmr.msra.gmra.mrb[4].mxu0 %vm118_vm0, %v271_v23 }
 0x1bc   : > { %1417 = vmatpush1.bf16.msra.mxu0 %v1416_v15  ;;  %637 = vmatprep.mubr.f32.mxu0 %v1798_v30  ;;  %v1474_v15 = vpack.c.bf16 %v787_v7, %v783_v3  ;;  %v791_v26 = vld [vmem:[#allocation10 + $0x198] sm:$0xff]  ;;  %v684_v7 = vld [vmem:[#allocation9 + $0x40] sm:$0xff] }
 0x1bd   : > { %1419 = vmatprep.subr.bf16.mxu0 %v1418_v16  ;;  %v1444_v16 = vpack.c.bf16 %v784_v9, %v780_v8  ;;  %v688_v8 = vld [vmem:[#allocation9 + $0x60] sm:$0xff]  ;;  %v1522_v9 = vpack.c.bf16 %v691_v6, %v687_v1  ;;  %v723_v1 = vld [vmem:[#allocation9 + $0x178] sm:$0xff] }
 0x1be   : > { %v720_v6 = vld [vmem:[#allocation9 + $0x160] sm:$0xff] }
 0x1bf   : > { %1445 = vmatpush1.bf16.msra.mxu1 %v1444_v16  ;;  %v686_v16 = vld [vmem:[#allocation9 + $0x50] sm:$0xff] }
 0x1c0   : > { %1421 = vmatpush1.bf16.msra.mxu0 %v1420_v28  ;;  %v1446_v28 = vpack.c.bf16 %v793_v25, %v789_v24  ;;  %v697_v24 = vld [vmem:[#allocation9 + $0xa8] sm:$0xff]  ;;  %v695_v25 = vld [vmem:[#allocation9 + $0x98] sm:$0xff] }
 0x1c1   : > { %1455 = vmatprep.subr.bf16.mxu0 %v1454_v29  ;;  %v795_v29 = vld [vmem:[#allocation10 + $0x1b8] sm:$0xff] }
 0x1c2   : > { %v1478_v34 = vpack.c.bf16 %v795_v29, %v791_v26  ;;  %1447 = vmatprep.subr.bf16.mxu1 %v1446_v28  ;;  %v699_v28 = vld [vmem:[#allocation9 + $0xb8] sm:$0xff]  ;;  %v692_v29 = vld [vmem:[#allocation9 + $0x80] sm:$0xff] }
 0x1c3   : > { %1259 = vmatmul.mubr.msk.f32.vlgmr.msra.gmra.mrb[2].mxu0 %vm118_vm0, %v271_v23  ;;  %v1476_v23 = vpack.c.bf16 %v786_v22, %v782_v17  ;;  %1449 = vmatpush1.bf16.msra.mxu1 %v1448_v35  ;;  %v690_v17 = vld [vmem:[#allocation9 + $0x70] sm:$0xff]  ;;  %v1526_v33 = vpack.c.bf16 %v699_v28, %v695_v25  ;;  %v724_v28 = vld [vmem:[#allocation9 + $0x180] sm:$0xff] }
 0x1c4   : > { %1457 = vmatpush1.bf16.msra.mxu0 %v1456_v36  ;;  %939 = vmatprep.mubr.f32.mxu0 %v1798_v30  ;;  %v790_v36 = vld [vmem:[#allocation10 + $0x190] sm:$0xff]  ;;  %v1524_v22 = vpack.c.bf16 %v690_v17, %v686_v16  ;;  %v725_v16 = vld [vmem:[#allocation9 + $0x188] sm:$0xff] }
 0x1c5   : > { %1459 = vmatprep.subr.bf16.mxu0 %v1458_v37  ;;  %v794_v37 = vld [vmem:[#allocation10 + $0x1b0] sm:$0xff] }
 0x1c6   : > { %v1480_v38 = vpack.c.bf16 %v794_v37, %v790_v36  ;;  %v694_v35 = vld [vmem:[#allocation9 + $0x90] sm:$0xff] }
 0x1c7   : > { %v698_v36 = vld [vmem:[#allocation9 + $0xb0] sm:$0xff] }
 0x1c8   : > { %1461 = vmatpush1.bf16.msra.mxu0 %v1460_v42  ;;  %v1450_v42 = vpack.c.bf16 %v801_v40, %v797_v39  ;;  %v1528_v37 = vpack.c.bf16 %v698_v36, %v694_v35  ;;  %v705_v39 = vld [vmem:[#allocation9 + $0xe8] sm:$0xff]  ;;  %v703_v40 = vld [vmem:[#allocation9 + $0xd8] sm:$0xff] }
 0x1c9   : > { %1463 = vmatprep.subr.bf16.mxu0 %v1462_v43  ;;  %v803_v43 = vld [vmem:[#allocation10 + $0x1f8] sm:$0xff]  ;;  %v733_v35 = vld [vmem:[#allocation9 + $0x1c8] sm:$0xff] }
 0x1ca   : > { %v1482_v46 = vpack.c.bf16 %v803_v43, %v799_v41  ;;  %1451 = vmatprep.subr.bf16.mxu1 %v1450_v42  ;;  %v707_v42 = vld [vmem:[#allocation9 + $0xf8] sm:$0xff]  ;;  %v700_v43 = vld [vmem:[#allocation9 + $0xc0] sm:$0xff]  ;;  %v737_v36 = vld [vmem:[#allocation9 + $0x1e8] sm:$0xff] }
 0x1cb   : > { %1453 = vmatpush1.bf16.msra.mxu1 %v1452_v47  ;;  %v1530_v45 = vpack.c.bf16 %v707_v42, %v703_v40  ;;  %v702_v47 = vld [vmem:[#allocation9 + $0xd0] sm:$0xff]  ;;  %v739_v40 = vld [vmem:[#allocation9 + $0x1f8] sm:$0xff] }
 0x1cc   : > { %1465 = vmatpush1.bf16.msra.mxu0 %v1464_v48  ;;  %v798_v48 = vld [vmem:[#allocation10 + $0x1d0] sm:$0xff] }
 0x1cd   : > { %1467 = vmatprep.subr.bf16.mxu0 %v1466_v49  ;;  %v802_v49 = vld [vmem:[#allocation10 + $0x1f0] sm:$0xff] }
 0x1ce   : > { %v1484_v50 = vpack.c.bf16 %v802_v49, %v798_v48  ;;  %869 = vmatmul.mubr.f32.vlgmr.msra.gmra.mrb[2].mxu1 %v674_v61  ;;  %v706_v48 = vld [vmem:[#allocation9 + $0xf0] sm:$0xff] }
 0x1cf   : > { %1010 = vmatprep.mubr.f32.mxu1 %v1798_v30  ;;  %v1532_v49 = vpack.c.bf16 %v706_v48, %v702_v47 }
 0x1d0   : > { %1469 = vmatpush1.bf16.msra.mxu0 %v1468_v32  ;;  %v681_v32 = vld [vmem:[#allocation9 + $0x28] sm:$0xff] }
 0x1d1   : > { %1471 = vmatprep.subr.bf16.mxu0 %v1470_v59  ;;  %v1486_v53 = vpack.c.bf16 %v681_v32, %v677_v51  ;;  %v678_v59 = vld [vmem:[#allocation9 + $0x10] sm:$0xff]  ;;  %v713_v51 = vld [vmem:[#allocation9 + $0x128] sm:$0xff]  ;;  %v711_v32 = vld [vmem:[#allocation9 + $0x118] sm:$0xff] }
 0x1d2   : > { %v1520_v62 = vpack.c.bf16 %v682_v60, %v678_v59  ;;  %v714_v59 = vld [vmem:[#allocation9 + $0x130] sm:$0xff] }
 0x1d3   : > { %1487 = vmatprep.subr.bf16.mxu1 %v1486_v53  ;;  %v715_v53 = vld [vmem:[#allocation9 + $0x138] sm:$0xff] }
 0x1d4   : > { %1473 = vmatpush1.bf16.msra.mxu0 %v1472_v63  ;;  %v685_v63 = vld [vmem:[#allocation9 + $0x48] sm:$0xff]  ;;  %1489 = vmatpush1.bf16.msra.mxu1 %v1488_v58  ;;  %v1534_v56 = vpack.c.bf16 %v715_v53, %v711_v32  ;;  %v710_v58 = vld [vmem:[#allocation9 + $0x110] sm:$0xff] }
 0x1d5   : > { %1475 = vmatprep.subr.bf16.mxu0 %v1474_v15  ;;  %v1490_v3 = vpack.c.bf16 %v689_v0, %v685_v63  ;;  %v1492_v15 = vpack.c.bf16 %v688_v8, %v684_v7  ;;  %v1536_v60 = vpack.c.bf16 %v714_v59, %v710_v58  ;;  %v719_v63 = vld [vmem:[#allocation9 + $0x158] sm:$0xff] }
 0x1d6   : > { %v1538_v7 = vpack.c.bf16 %v723_v1, %v719_v63 }
 0x1d7   : > { %1491 = vmatprep.subr.bf16.mxu1 %v1490_v3  ;;  %v716_v3 = vld [vmem:[#allocation9 + $0x140] sm:$0xff] }
 0x1d8   : > { %1477 = vmatpush1.bf16.msra.mxu0 %v1476_v23  ;;  %v693_v23 = vld [vmem:[#allocation9 + $0x88] sm:$0xff]  ;;  %1493 = vmatpush1.bf16.msra.mxu1 %v1492_v15  ;;  %v1508_v8 = vpack.c.bf16 %v720_v6, %v716_v3  ;;  %v722_v15 = vld [vmem:[#allocation9 + $0x170] sm:$0xff] }
 0x1d9   : > { %1479 = vmatprep.subr.bf16.mxu0 %v1478_v34  ;;  %v1494_v26 = vpack.c.bf16 %v697_v24, %v693_v23  ;;  %v1496_v34 = vpack.c.bf16 %v696_v31, %v692_v29  ;;  %v727_v23 = vld [vmem:[#allocation9 + $0x198] sm:$0xff]  ;;  %v728_v29 = vld [vmem:[#allocation9 + $0x1a0] sm:$0xff]  ;;  %v726_v31 = vld [vmem:[#allocation9 + $0x190] sm:$0xff] }
 0x1da   : > { %v731_v24 = vld [vmem:[#allocation9 + $0x1b8] sm:$0xff] }
 0x1db   : > { %1495 = vmatprep.subr.bf16.mxu1 %v1494_v26  ;;  %v1542_v26 = vpack.c.bf16 %v731_v24, %v727_v23  ;;  %v1119_v23 = vld [vmem:[#allocation12 + $0x8] sm:$0xff] }
 0x1dc   : > { %1481 = vmatpush1.bf16.msra.mxu0 %v1480_v38  ;;  %v701_v38 = vld [vmem:[#allocation9 + $0xc8] sm:$0xff]  ;;  %1497 = vmatpush1.bf16.msra.mxu1 %v1496_v34  ;;  %v730_v34 = vld [vmem:[#allocation9 + $0x1b0] sm:$0xff] }
 0x1dd   : > { %1483 = vmatprep.subr.bf16.mxu0 %v1482_v46  ;;  %v1498_v41 = vpack.c.bf16 %v705_v39, %v701_v38  ;;  %v1500_v46 = vpack.c.bf16 %v704_v44, %v700_v43  ;;  %v1514_v38 = vpack.c.bf16 %v737_v36, %v733_v35  ;;  %v735_v39 = vld [vmem:[#allocation9 + $0x1d8] sm:$0xff]  ;;  %v736_v43 = vld [vmem:[#allocation9 + $0x1e0] sm:$0xff]  ;;  %v734_v44 = vld [vmem:[#allocation9 + $0x1d0] sm:$0xff] }
 0x1de   : > { %v1546_v42 = vpack.c.bf16 %v739_v40, %v735_v39  ;;  %v1126_v36 = vld [vmem:[#allocation12 + $0x40] sm:$0xff]  ;;  %v1128_v39 = vld [vmem:[#allocation12 + $0x50] sm:$0xff]  ;;  %v1129_v40 = vld [vmem:[#allocation12 + $0x58] sm:$0xff] }
 0x1df   : > { %1499 = vmatprep.subr.bf16.mxu1 %v1498_v41  ;;  %v732_v41 = vld [vmem:[#allocation9 + $0x1c0] sm:$0xff] }
 0x1e0   : > { %1485 = vmatpush1.bf16.msra.mxu0 %v1484_v50  ;;  %v709_v50 = vld [vmem:[#allocation9 + $0x108] sm:$0xff]  ;;  %1501 = vmatpush1.bf16.msra.mxu1 %v1500_v46  ;;  %v1516_v46 = vpack.c.bf16 %v736_v43, %v732_v41  ;;  %v1130_v41 = vld [vmem:[#allocation12 + $0x60] sm:$0xff] }
 0x1e1   : > { %1519 = vmatprep.subr.bf16.mxu0 %v1518_v57  ;;  %v1502_v52 = vpack.c.bf16 %v713_v51, %v709_v50  ;;  %v1504_v57 = vpack.c.bf16 %v712_v55, %v708_v54  ;;  %v1131_v43 = vld [vmem:[#allocation12 + $0x68] sm:$0xff] }
 0x1e3   : > { %940 = vmatmul.mubr.f32.vlgmr.msra.gmra.mrb[6].mxu0 %v674_v61  ;;  %1503 = vmatprep.subr.bf16.mxu1 %v1502_v52  ;;  %v717_v61 = vld [vmem:[#allocation9 + $0x148] sm:$0xff] }
 0x1e4   : > { %1521 = vmatpush1.bf16.msra.mxu0 %v1520_v62  ;;  %1081 = vmatprep.mubr.f32.mxu0 %v1798_v30  ;;  %v721_v62 = vld [vmem:[#allocation9 + $0x168] sm:$0xff] }
 0x1e5   : > { %1523 = vmatprep.subr.bf16.mxu0 %v1522_v9  ;;  %1505 = vmatpush1.bf16.msra.mxu1 %v1504_v57  ;;  %v1506_v0 = vpack.c.bf16 %v721_v62, %v717_v61  ;;  %v718_v9 = vld [vmem:[#allocation9 + $0x150] sm:$0xff] }
 0x1e6   : > { %v1540_v17 = vpack.c.bf16 %v722_v15, %v718_v9 }
 0x1e7   : > { %1507 = vmatprep.subr.bf16.mxu1 %v1506_v0  ;;  %v276_v0 = vld [vmem:[#allocation3] sm:$0xff] }
 0x1e8   : > { %1525 = vmatpush1.bf16.msra.mxu0 %v1524_v22  ;;  %v729_v22 = vld [vmem:[#allocation9 + $0x1a8] sm:$0xff] }
 0x1e9   : > { %1527 = vmatprep.subr.bf16.mxu0 %v1526_v33  ;;  %v1510_v25 = vpack.c.bf16 %v729_v22, %v725_v16  ;;  %1509 = vmatpush1.bf16.msra.mxu1 %v1508_v8  ;;  %v1512_v33 = vpack.c.bf16 %v728_v29, %v724_v28  ;;  %v1118_v22 = vld [vmem:[#allocation12] sm:$0xff] }
 0x1ea   : > { %v1551_v24 = vpack.c.bf16 %v1119_v23, %v1118_v22  ;;  %v1122_v29 = vld [vmem:[#allocation12 + $0x20] sm:$0xff] }
 0x1eb   : > { %1511 = vmatprep.subr.bf16.mxu1 %v1510_v25  ;;  %v1120_v25 = vld [vmem:[#allocation12 + $0x10] sm:$0xff] }
 0x1ec   : > { %1529 = vmatpush1.bf16.msra.mxu0 %v1528_v37  ;;  %v1544_v37 = vpack.c.bf16 %v730_v34, %v726_v31  ;;  %v1123_v31 = vld [vmem:[#allocation12 + $0x28] sm:$0xff]  ;;  %v1124_v34 = vld [vmem:[#allocation12 + $0x30] sm:$0xff] }
 0x1ed   : > { %1531 = vmatprep.subr.bf16.mxu0 %v1530_v45  ;;  %v738_v45 = vld [vmem:[#allocation9 + $0x1f0] sm:$0xff]  ;;  %1513 = vmatpush1.bf16.msra.mxu1 %v1512_v33  ;;  %v1557_v33 = vpack.c.bf16 %v1123_v31, %v1122_v29 }
 0x1ee   : > { %1515 = vmatprep.subr.bf16.mxu1 %v1514_v38  ;;  %v1548_v47 = vpack.c.bf16 %v738_v45, %v734_v44  ;;  %v1569_v44 = vpack.c.bf16 %v1131_v43, %v1130_v41  ;;  %v1132_v45 = vld [vmem:[#allocation12 + $0x70] sm:$0xff] }
 0x1f0   : > { %1533 = vmatpush1.bf16.msra.mxu0 %v1532_v49 }
 0x1f1   : > { %1535 = vmatprep.subr.bf16.mxu0 %v1534_v56  ;;  %1517 = vmatpush1.bf16.msra.mxu1 %v1516_v46  ;;  %v1133_v46 = vld [vmem:[#allocation12 + $0x78] sm:$0xff] }
 0x1f2   : > { %1550 = vmatprep.subr.bf16.mxu1 %v1797_v27 }
 0x1f4   : > { %1537 = vmatpush1.bf16.msra.mxu0 %v1536_v60 }
 0x1f5   : > { %1539 = vmatprep.subr.bf16.mxu0 %v1538_v7 }
 0x1f8   : > { %1541 = vmatpush1.bf16.msra.mxu0 %v1540_v17 }
 0x1f9   : > { %1543 = vmatprep.subr.bf16.mxu0 %v1542_v26  ;;  %v1121_v26 = vld [vmem:[#allocation12 + $0x18] sm:$0xff] }
 0x1fa   : > { %v1554_v28 = vpack.c.bf16 %v1121_v26, %v1120_v25 }
 0x1fc   : > { %1545 = vmatpush1.bf16.msra.mxu0 %v1544_v37  ;;  %v1127_v37 = vld [vmem:[#allocation12 + $0x48] sm:$0xff] }
 0x1fd   : > { %1547 = vmatprep.subr.bf16.mxu0 %v1546_v42  ;;  %v1563_v38 = vpack.c.bf16 %v1127_v37, %v1126_v36  ;;  %v1566_v42 = vpack.c.bf16 %v1129_v40, %v1128_v39 }
 0x200   : > { %1549 = vmatpush1.bf16.msra.mxu0 %v1548_v47  ;;  %v1572_v47 = vpack.c.bf16 %v1133_v46, %v1132_v45 }
 0x28e   : > { %v568_v48 = vpop.f32.mrb[4].mxu0 }
 0x28f   : > { %v569_v49 = vadd.f32 %v568_v48, %v2048_v4  ;;  %v570_v50 = vpop.f32.mrb[5].mxu0 }
 0x290   : > { %v571_v51 = vadd.f32 %v570_v50, %v2050_v5 }
 0x291   : > { %v644_v32 = vadd.f32 %v569_v49, %v1978_v11 }
 0x292   : > { %v645_v52 = vadd.f32 %v571_v51, %v1980_v12 }
 0x293   : > { %v1260_v53 = vmul.f32 -1.442695, %v644_v32 }
 0x294   : > { %v1261_v54 = vmul.f32 -1.442695, %v645_v52 }
 0x295   : > { %1606 = vpow2.f32 %v1260_v53 }
 0x296   : > { %1608 = vpow2.f32 %v1261_v54  ;;  %v639_v55 = vpop.f32.mrb[2].mxu0 }
 0x297   : > { %v641_v56 = vpop.f32.mrb[3].mxu0  ;;  %v646_v59 = vadd.f32 %v639_v55, %v1982_v13 }
 0x298   : > { %v647_v57 = vadd.f32 %v641_v56, %v1984_v14 }
 0x29a   : > { %v1262_v58 = vmul.f32 -1.442695, %v647_v57 }
 0x29c   : > { %1610 = vpow2.f32 %v1262_v58 }
 0x29d   : > { %1612 = vtanh.f32 %v646_v59 }
 0x29f   : > { %v1607_v60 = vpop.eup %1606 }
 0x2a0   : > { %v1609_v4 = vpop.eup %1608  ;;  %v651_v61 = vadd.f32 1.0, %v1607_v60 }
 0x2a1   : > { %v657_v5 = vadd.f32 1.0, %v1609_v4 }
 0x2a2   : > { %1614 = vrcp.f32 %v651_v61 }
 0x2a3   : > { %1616 = vrcp.f32 %v657_v5  ;;  %v675_v5 = vld [vmem:[#allocation3 + $0x8] sm:$0xff] }
 0x2a6   : > { %v1611_v62 = vpop.eup %1610 }
 0x2a7   : > { %v1613_v63 = vpop.eup %1612  ;;  %v664_v7 = vadd.f32 1.0, %v1611_v62 }
 0x2a9   : > { %1618 = vrcp.f32 %v664_v7 }
 0x2ac   : > { %v1615_v1 = vpop.eup %1614 }
 0x2ad   : > { %v1617_v3 = vpop.eup %1616  ;;  %v668_v6 = vmul.f32 %v1615_v1, %v1613_v63 }
 0x2ae   : > { %v667_v8 = vmul.f32 %v1617_v3, %v276_v0 }
 0x2b0   : > { %v669_v9 = vadd.f32 %v668_v6, %v667_v8 }
 0x2b2   : > { %1620 = vtanh.f32 %v669_v9  ;;  %673 = vst [vmem:[#allocation3] sm:$0xff] %v669_v9 }
 0x2b3   : > { %v1619_v15 = vpop.eup %1618 }
 0x2b9   :  { %v1208_v23 = vld [vmem:[#allocation3] sm:$0xff] (%p185_p12) }
 0x2ba   :  { %1209 = vst.msk [vmem:[%s2129_s14] sm:$0xff] (%p185_p12), %vm118_vm0, %v1208_v23 }
 0x2bc   : > { %v1621_v16 = vpop.eup %1620 }
 0x2bd   : > { %v671_v17 = vmul.f32 %v1621_v16, %v1619_v15 }
 0x2bf   : > { %672 = vst [vmem:[#allocation2] sm:$0xff] %v671_v17  ;;  %1011 = vmatmul.mubr.f32.vlgmr.msra.gmra.mrb[2].mxu1 %v671_v17  ;;  %1082 = vmatmul.mubr.f32.vlgmr.msra.gmra.mrb[6].mxu0 %v671_v17 }
 0x2c0   : > { %1333 = vmatprep.mubr.msk.f32.mxu1 %vm1799_vm1, %v1798_v30  ;;  %1552 = vmatpush3.bf16.msra.mxu1 %v1551_v24  ;;  %v1125_v30 = vld [vmem:[#allocation12 + $0x38] sm:$0xff] }
 0x2c1   : > { %1553 = vmatprep.subr.bf16.mxu1 %v1797_v27  ;;  %v1560_v35 = vpack.c.bf16 %v1125_v30, %v1124_v34 }
 0x2c4   : > { %1555 = vmatpush3.bf16.msra.mxu1 %v1554_v28 }
 0x2c5   : > { %1556 = vmatprep.subr.bf16.mxu1 %v1797_v27 }
 0x2c6   :  { %v1206_v22 = vld [vmem:[#allocation2] sm:$0xff] (%p185_p12) }
 0x2c7   :  { %1207 = vst.msk [vmem:[%s2128_s13] sm:$0xff] (%p185_p12), %vm118_vm0, %v1206_v22 }
 0x2c8   : > { %1558 = vmatpush3.bf16.msra.mxu1 %v1557_v33 }
 0x2c9   : > { %1559 = vmatprep.subr.bf16.mxu1 %v1797_v27 }
 0x2cc   : > { %1561 = vmatpush3.bf16.msra.mxu1 %v1560_v35 }
 0x2cd   : > { %1562 = vmatprep.subr.bf16.mxu1 %v1797_v27 }
 0x2d0   : > { %1564 = vmatpush3.bf16.msra.mxu1 %v1563_v38 }
 0x2d1   : > { %1565 = vmatprep.subr.bf16.mxu1 %v1797_v27 }
 0x2d4   : > { %1567 = vmatpush3.bf16.msra.mxu1 %v1566_v42 }
 0x2d5   : > { %1568 = vmatprep.subr.bf16.mxu1 %v1797_v27 }
 0x2d8   : > { %1570 = vmatpush3.bf16.msra.mxu1 %v1569_v44 }
 0x2d9   : > { %1571 = vmatprep.subr.bf16.mxu1 %v1797_v27 }
 0x2dc   : > { %1573 = vmatpush3.bf16.msra.mxu1 %v1572_v47 }
 0x392   : > { %v1012_v48 = vpop.f32.mrb[2].mxu1  ;;  %v1083_v49 = vpop.f32.mrb[6].mxu0 }
 0x393   : > { %v1088_v50 = vadd.f32 %v1012_v48, %v1995_v18  ;;  %v1014_v51 = vpop.f32.mrb[3].mxu1  ;;  %v1085_v32 = vpop.f32.mrb[7].mxu0  ;;  %v1090_v57 = vadd.f32 %v1083_v49, %v1999_v20 }
 0x394   : > { %v1089_v52 = vadd.f32 %v1014_v51, %v1997_v19  ;;  %v1091_v55 = vadd.f32 %v1085_v32, %v2001_v21 }
 0x395   : > { %v1263_v53 = vmul.f32 -1.442695, %v1088_v50 }
 0x396   : > { %v1264_v54 = vmul.f32 -1.442695, %v1089_v52  ;;  %v1265_v56 = vmul.f32 -1.442695, %v1091_v55 }
 0x397   : > { %1622 = vpow2.f32 %v1263_v53 }
 0x398   : > { %1624 = vpow2.f32 %v1264_v54 }
 0x399   : > { %1626 = vpow2.f32 %v1265_v56 }
 0x39a   : > { %1628 = vtanh.f32 %v1090_v57 }
 0x3a1   : > { %v1623_v58 = vpop.eup %1622 }
 0x3a2   : > { %v1625_v27 = vpop.eup %1624  ;;  %v1095_v59 = vadd.f32 1.0, %v1623_v58 }
 0x3a3   : > { %v1101_v60 = vadd.f32 1.0, %v1625_v27  ;;  %v1627_v4 = vpop.eup %1626 }
 0x3a4   : > { %1630 = vrcp.f32 %v1095_v59  ;;  %v1629_v61 = vpop.eup %1628  ;;  %v1108_v1 = vadd.f32 1.0, %v1627_v4 }
 0x3a5   : > { %1632 = vrcp.f32 %v1101_v60 }
 0x3a6   : > { %1634 = vrcp.f32 %v1108_v1 }
 0x3ae   : > { %v1631_v62 = vpop.eup %1630 }
 0x3af   : > { %v1633_v63 = vpop.eup %1632  ;;  %v1112_v0 = vmul.f32 %v1631_v62, %v1629_v61 }
 0x3b0   : > { %v1111_v3 = vmul.f32 %v1633_v63, %v675_v5  ;;  %v1635_v7 = vpop.eup %1634 }
 0x3b2   : > { %v1113_v6 = vadd.f32 %v1112_v0, %v1111_v3 }
 0x3b4   : > { %1117 = vst [vmem:[#allocation3 + $0x8] sm:$0xff] %v1113_v6  ;;  %1636 = vtanh.f32 %v1113_v6 }
 0x3bb   :  { %v1213_v25 = vld [vmem:[#allocation3 + $0x8] sm:$0xff] (%p185_p12) }
 0x3bc   :  { %1267 = vst.msk [vmem:[%s2129_s14 + $0x8] sm:$0xff] (%p185_p12), %vm118_vm0, %v1213_v25 }
 0x3be   : > { %v1637_v8 = vpop.eup %1636 }
 0x3bf   : > { %v1115_v9 = vmul.f32 %v1637_v8, %v1635_v7 }
 0x3c1   : > { %1116 = vst [vmem:[#allocation2 + $0x8] sm:$0xff] %v1115_v9  ;;  %1334 = vmatmul.mubr.f32.vlgmr.msra.gmra.mrb[4].mxu1 %v1115_v9 }
 0x3c8   :  { %v1210_v24 = vld [vmem:[#allocation2 + $0x8] sm:$0xff] (%p185_p12) }
 0x3c9   :  { %1266 = vst.msk [vmem:[%s2128_s13 + $0x8] sm:$0xff] (%p185_p12), %vm118_vm0, %v1210_v24 }
 0x491   :  { %187 = sbr.rel (!%p185_p12) target bundleno = 98 (0x62), region = 119 }
 0x494   : > { %v1200_v15 = vpop.f32.mrb[4].mxu1 }
 0x495   : > { %v1201_v16 = vadd.f32 %v1976_v10, %v1200_v15  ;;  %v1335_v17 = vpop.f32.mrb[5].mxu1 }
 0x497   : > { %1205 = vst [vmem:[%s1204_s17] sm:$0xff] %v1201_v16 }
 0x498   :  { %1759 = shalt.err (!%p1756_p3)
}
 0x499   :  { %s1760_s13 = scalar_lea.hbm %s2127_s12, 1024 }
 0x49a   :  { %p1761_p4 = scmp.ne.s32.totalorder %s2127_s12, %s1760_s13  ;;  %p1764_p5 = scmp.lt.u32.totalorder %s1760_s13, %s2127_s12 }
 0x49c   :  { %p1766_p6 = pnand %p1764_p5, %p1761_p4 }
 0x49e   :  { %1769 = shalt.err (!%p1766_p6)
}
 0x49f   :  { %1227 = dma.vmem_to_hbm [thread:$0]  %s1222_s0, 1024, %s2127_s12, [#allocation6], %s1793_s7, %s1793_s7, %s1794_s25  }
 0x4a0   :  { %1780 = dma.done.wait [#allocation6], 1024  }
 0x4a1   :  { %1781 = vsyncadd [#allocation6], 4294966272 }
 0x4a2   :  { %1239 = vsyncpa [#allocation5], 1 }
 0x4a3   :  { %1240 = vsyncpa [#allocation8], 1 }
 0x4a4   :  { %1241 = vsyncpa [#allocation11], 1 }
 0x4a5   :  { %1242 = vsyncpa [#allocation6], 1 }

</bundles_post_ra>
